<compile_context>
chip_gen: v7x
topology: tpu7x:2x2x1
jax: 0.10.0
libtpu: 0.0.40
codegen_flags: <defaults>
</compile_context>

<pallas_src>
import functools

import jax
import jax.numpy as jnp
from jax.experimental import pallas as pl
from jax.experimental.pallas import tpu as pltpu

L_POS = 10
L_DIR = 4
HIDDEN = 256
POS_DIM = L_POS * 6 + 3   # 63
DIR_DIM = L_DIR * 6 + 3   # 27
K_PAD = 128               # lane-aligned width for both embeddings
OUT_PAD = 128             # lane-dense output slab width


def positional_encoding(x, L):
    # Glue (elementwise + concat) done in plain JAX; matches the PyTorch
    # ordering: [x, sin(2^0 x), cos(2^0 x), sin(2^1 x), cos(2^1 x), ...]
    comps = [x]
    for j in range(L):
        comps.append(jnp.sin((2.0 ** j) * x))
        comps.append(jnp.cos((2.0 ** j) * x))
    return jnp.concatenate(comps, axis=1)


def nerf_mlp_kernel(
    x_ref, d_ref,
    w1, b1, w2, b2, w3, b3, w4, b4, w5, b5,
    w6a, w6b, b6, w7, b7, w8, b8,
    w9a, b9a, w9s, b9s,
    w10a, w10b, b10, w11, b11,
    out_ref,
):
    x = x_ref[...]   # (tn, 128) bf16, lanes >= 63 are zero
    d = d_ref[...]   # (tn, 128) bf16, lanes >= 27 are zero

    def lin(h, w, b):
        return jnp.dot(h, w[...], preferred_element_type=jnp.float32) + b[...]

    def relu_bf16(v):
        return jnp.maximum(v, 0.0).astype(jnp.bfloat16)

    h = relu_bf16(lin(x, w1, b1))
    h = relu_bf16(lin(h, w2, b2))
    h = relu_bf16(lin(h, w3, b3))
    h = relu_bf16(lin(h, w4, b4))
    h = relu_bf16(lin(h, w5, b5))
    # fc6 on cat(h, x_emb): split weights -> h @ W6a + x_emb @ W6b
    h = relu_bf16(
        jnp.dot(h, w6a[...], preferred_element_type=jnp.float32)
        + jnp.dot(x, w6b[...], preferred_element_type=jnp.float32)
        + b6[...])
    h = relu_bf16(lin(h, w7, b7))
    h = relu_bf16(lin(h, w8, b8))
    # fc9 -> 257 outputs: first 256 = features (no relu), last = sigma.
    feat = lin(h, w9a, b9a)          # (tn, 256) f32
    sigma = lin(h, w9s, b9s)         # (tn, 128) f32; real value in lane 3
    # fc10 on cat(feat, d_emb): split weights.
    h = relu_bf16(
        jnp.dot(feat.astype(jnp.bfloat16), w10a[...],
                preferred_element_type=jnp.float32)
        + jnp.dot(d, w10b[...], preferred_element_type=jnp.float32)
        + b10[...])
    color = lin(h, w11, b11)         # (tn, 128) f32; real values in lanes 0..2
    # Single lane-dense output slab: lanes 0..2 = sigmoid(color), lane 3 =
    # relu(sigma), remaining lanes are harmless zeros (zero weights/bias).
    lane = jax.lax.broadcasted_iota(jnp.int32, color.shape, 1)
    out_ref[...] = jnp.where(lane < 3,
                             jax.nn.sigmoid(color),
                             jnp.maximum(sigma, 0.0))


def init_params(key):
    """Parameters mimicking PyTorch Linear default init U(-k, k), k=1/sqrt(fan_in),
    pre-transposed to (in, out), split at concat boundaries, zero-padded to
    lane-aligned widths, weights cast to bf16 (biases stay f32)."""

    def linear(key, fan_in, fan_out):
        kw, kb = jax.random.split(key)
        k = 1.0 / jnp.sqrt(float(fan_in))
        w = jax.random.uniform(kw, (fan_in, fan_out), jnp.float32, -k, k)
        b = jax.random.uniform(kb, (1, fan_out), jnp.float32, -k, k)
        return w, b

    keys = jax.random.split(key, 11)
    w1, b1 = linear(keys[0], POS_DIM, HIDDEN)
    w1p = jnp.zeros((K_PAD, HIDDEN), jnp.float32).at[:POS_DIM].set(w1)
    w2, b2 = linear(keys[1], HIDDEN, HIDDEN)
    w3, b3 = linear(keys[2], HIDDEN, HIDDEN)
    w4, b4 = linear(keys[3], HIDDEN, HIDDEN)
    w5, b5 = linear(keys[4], HIDDEN, HIDDEN)
    # fc6: in = HIDDEN + POS_DIM -> split; pad the POS_DIM part to K_PAD rows.
    w6, b6 = linear(keys[5], HIDDEN + POS_DIM, HIDDEN)
    w6a = w6[:HIDDEN]
    w6bp = jnp.zeros((K_PAD, HIDDEN), jnp.float32).at[:POS_DIM].set(w6[HIDDEN:])
    w7, b7 = linear(keys[6], HIDDEN, HIDDEN)
    w8, b8 = linear(keys[7], HIDDEN, HIDDEN)
    # fc9: out = HIDDEN + 1 -> split; the sigma column is placed in lane 3 of a
    # 128-wide padded weight so the kernel's output store is lane-dense.
    w9, b9 = linear(keys[8], HIDDEN, HIDDEN + 1)
    w9a, b9a = w9[:, :HIDDEN], b9[:, :HIDDEN]
    w9sp = jnp.zeros((HIDDEN, OUT_PAD), jnp.float32).at[:, 3].set(w9[:, HIDDEN])
    b9sp = jnp.zeros((1, OUT_PAD), jnp.float32).at[0, 3].set(b9[0, HIDDEN])
    # fc10: in = HIDDEN + DIR_DIM -> split; pad the DIR_DIM part to K_PAD rows.
    w10, b10 = linear(keys[9], HIDDEN + DIR_DIM, HIDDEN // 2)
    w10a = w10[:HIDDEN]
    w10bp = jnp.zeros((K_PAD, HIDDEN // 2), jnp.float32).at[:DIR_DIM].set(w10[HIDDEN:])
    # fc11: out = 3 -> pad to 128 output lanes (color in lanes 0..2).
    w11, b11 = linear(keys[10], HIDDEN // 2, 3)
    w11p = jnp.zeros((HIDDEN // 2, OUT_PAD), jnp.float32).at[:, :3].set(w11)
    b11p = jnp.zeros((1, OUT_PAD), jnp.float32).at[0, :3].set(b11[0])

    bf = lambda w: w.astype(jnp.bfloat16)
    return [bf(w1p), b1, bf(w2), b2, bf(w3), b3, bf(w4), b4, bf(w5), b5,
            bf(w6a), bf(w6bp), b6, bf(w7), b7, bf(w8), b8,
            bf(w9a), b9a, bf(w9sp), b9sp,
            bf(w10a), bf(w10bp), b10, bf(w11p), b11p]


@functools.partial(jax.jit, static_argnames=("tn",))
def nerf_mlp_forward(xyz, d, params, tn=512):
    n = xyz.shape[0]
    # Shrink the row tile for tiny batches (still a multiple of 16 for bf16
    # sublane packing); otherwise use the large MXU-friendly tile.
    tn_eff = min(tn, max(16, ((n + 15) // 16) * 16))
    n_pad = ((n + tn_eff - 1) // tn_eff) * tn_eff

    x_emb = positional_encoding(xyz, L_POS)   # (n, 63) f32
    d_emb = positional_encoding(d, L_DIR)     # (n, 27) f32
    x_emb = jnp.pad(x_emb, ((0, n_pad - n), (0, K_PAD - POS_DIM))).astype(jnp.bfloat16)
    d_emb = jnp.pad(d_emb, ((0, n_pad - n), (0, K_PAD - DIR_DIM))).astype(jnp.bfloat16)

    grid = (n_pad // tn_eff,)

    in_specs = [
        pl.BlockSpec((tn_eff, K_PAD), lambda i: (i, 0)),
        pl.BlockSpec((tn_eff, K_PAD), lambda i: (i, 0)),
    ]
    # Parameters: full-array blocks, resident across the whole grid.
    in_specs += [pl.BlockSpec(p.shape, lambda i: (0, 0)) for p in params]

    out_specs = pl.BlockSpec((tn_eff, OUT_PAD), lambda i: (i, 0))
    out_shape = jax.ShapeDtypeStruct((n_pad, OUT_PAD), jnp.float32)

    # Advisory cost hint for XLA scheduling around the custom call.
    flops = 2 * n_pad * (
        8 * HIDDEN * HIDDEN            # fc2..fc5, fc6a, fc7, fc8, fc9a
        + 2 * K_PAD * HIDDEN           # fc1, fc6b
        + 2 * HIDDEN * OUT_PAD         # fc9 (sigma, padded), fc10a
        + 2 * (HIDDEN // 2) * OUT_PAD) # fc10b, fc11 (padded)
    param_bytes = sum(int(p.size) * p.dtype.itemsize for p in params)
    bytes_accessed = n_pad * (2 * K_PAD * 2 + OUT_PAD * 4) + param_bytes
    cost = pl.CostEstimate(flops=flops,
                           transcendentals=n_pad * OUT_PAD,
                           bytes_accessed=bytes_accessed)

    out = pl.pallas_call(
        nerf_mlp_kernel,
        grid=grid,
        in_specs=in_specs,
        out_specs=out_specs,
        out_shape=out_shape,
        compiler_params=pltpu.CompilerParams(
            dimension_semantics=("parallel",),
            vmem_limit_bytes=48 * 1024 * 1024),
        cost_estimate=cost,
    )(x_emb, d_emb, *params)

    color = out[:n, :3]
    density = out[:n, 3]
    return color, density


def reference_forward(xyz, d, params):
    # Pure-JAX reference with identical math; mirrors the kernel's bf16
    # rounding so the numerical check is tight.
    (w1, b1, w2, b2, w3, b3, w4, b4, w5, b5,
     w6a, w6b, b6, w7, b7, w8, b8,
     w9a, b9a, w9s, b9s,
     w10a, w10b, b10, w11, b11) = params
    f32 = lambda a: a.astype(jnp.float32)
    rb = lambda a: a.astype(jnp.bfloat16).astype(jnp.float32)
    relu = lambda v: jnp.maximum(v, 0.0)

    x_emb = rb(jnp.pad(positional_encoding(xyz, L_POS),
                       ((0, 0), (0, K_PAD - POS_DIM))))
    d_emb = rb(jnp.pad(positional_encoding(d, L_DIR),
                       ((0, 0), (0, K_PAD - DIR_DIM))))

    h = rb(relu(x_emb @ f32(w1) + b1))
    h = rb(relu(h @ f32(w2) + b2))
    h = rb(relu(h @ f32(w3) + b3))
    h = rb(relu(h @ f32(w4) + b4))
    h = rb(relu(h @ f32(w5) + b5))
    h = rb(relu(h @ f32(w6a) + x_emb @ f32(w6b) + b6))
    h = rb(relu(h @ f32(w7) + b7))
    h = rb(relu(h @ f32(w8) + b8))
    feat = h @ f32(w9a) + b9a
    sigma = h @ f32(w9s) + b9s
    density = relu(sigma[:, 3])
    h = rb(relu(rb(feat) @ f32(w10a) + d_emb @ f32(w10b) + b10))
    color = jax.nn.sigmoid(h @ f32(w11) + b11)[:, :3]
    return color, density


if __name__ == "__main__":
    key = jax.random.PRNGKey(0)
    kp, kx, kd = jax.random.split(key, 3)
    params = init_params(kp)

    N = 16
    xyz = jax.random.normal(kx, (N, 3), jnp.float32)
    dirs = jax.random.normal(kd, (N, 3), jnp.float32)

    color, density = nerf_mlp_forward(xyz, dirs, params)
    jax.block_until_ready((color, density))

    ref_color, ref_density = reference_forward(xyz, dirs, params)
    assert color.shape == (N, 3) and density.shape == (N,)
    assert jnp.allclose(color, ref_color, atol=2e-3, rtol=2e-3), \
        float(jnp.max(jnp.abs(color - ref_color)))
    assert jnp.allclose(density, ref_density, atol=2e-3, rtol=2e-2), \
        float(jnp.max(jnp.abs(density - ref_density)))

    print("KERNEL_OK")
</pallas_src>

<mosaic_0001>
module attributes {stable_mosaic.version = 11 : i64} {
  func.func @nerf_mlp_kernel(%arg0: i32, %arg1: memref<16x128xbf16, #tpu.memory_space<vmem>>, %arg2: memref<16x128xbf16, #tpu.memory_space<vmem>>, %arg3: memref<128x256xbf16, #tpu.memory_space<vmem>>, %arg4: memref<1x256xf32, #tpu.memory_space<vmem>>, %arg5: memref<256x256xbf16, #tpu.memory_space<vmem>>, %arg6: memref<1x256xf32, #tpu.memory_space<vmem>>, %arg7: memref<256x256xbf16, #tpu.memory_space<vmem>>, %arg8: memref<1x256xf32, #tpu.memory_space<vmem>>, %arg9: memref<256x256xbf16, #tpu.memory_space<vmem>>, %arg10: memref<1x256xf32, #tpu.memory_space<vmem>>, %arg11: memref<256x256xbf16, #tpu.memory_space<vmem>>, %arg12: memref<1x256xf32, #tpu.memory_space<vmem>>, %arg13: memref<256x256xbf16, #tpu.memory_space<vmem>>, %arg14: memref<128x256xbf16, #tpu.memory_space<vmem>>, %arg15: memref<1x256xf32, #tpu.memory_space<vmem>>, %arg16: memref<256x256xbf16, #tpu.memory_space<vmem>>, %arg17: memref<1x256xf32, #tpu.memory_space<vmem>>, %arg18: memref<256x256xbf16, #tpu.memory_space<vmem>>, %arg19: memref<1x256xf32, #tpu.memory_space<vmem>>, %arg20: memref<256x256xbf16, #tpu.memory_space<vmem>>, %arg21: memref<1x256xf32, #tpu.memory_space<vmem>>, %arg22: memref<256x128xbf16, #tpu.memory_space<vmem>>, %arg23: memref<1x128xf32, #tpu.memory_space<vmem>>, %arg24: memref<256x128xbf16, #tpu.memory_space<vmem>>, %arg25: memref<128x128xbf16, #tpu.memory_space<vmem>>, %arg26: memref<1x128xf32, #tpu.memory_space<vmem>>, %arg27: memref<128x128xbf16, #tpu.memory_space<vmem>>, %arg28: memref<1x128xf32, #tpu.memory_space<vmem>>, %arg29: memref<16x128xf32, #tpu.memory_space<vmem>>) attributes {dimension_semantics = [#tpu.dimension_semantics<parallel>], iteration_bounds = array<i64: 1>, scalar_prefetch = 0 : i64, scratch_operands = 0 : i64, tpu.core_type = #tpu.core_type<tc>, window_params = [{transform_indices = @transform_0, window_bounds = array<i64: 16, 128>}, {transform_indices = @transform_1, window_bounds = array<i64: 16, 128>}, {pipeline_mode = #tpu.pipeline_mode<synchronous>, transform_indices = @transform_2, window_bounds = array<i64: 128, 256>}, {pipeline_mode = #tpu.pipeline_mode<synchronous>, transform_indices = @transform_3, window_bounds = array<i64: 1, 256>}, {pipeline_mode = #tpu.pipeline_mode<synchronous>, transform_indices = @transform_4, window_bounds = array<i64: 256, 256>}, {pipeline_mode = #tpu.pipeline_mode<synchronous>, transform_indices = @transform_5, window_bounds = array<i64: 1, 256>}, {pipeline_mode = #tpu.pipeline_mode<synchronous>, transform_indices = @transform_6, window_bounds = array<i64: 256, 256>}, {pipeline_mode = #tpu.pipeline_mode<synchronous>, transform_indices = @transform_7, window_bounds = array<i64: 1, 256>}, {pipeline_mode = #tpu.pipeline_mode<synchronous>, transform_indices = @transform_8, window_bounds = array<i64: 256, 256>}, {pipeline_mode = #tpu.pipeline_mode<synchronous>, transform_indices = @transform_9, window_bounds = array<i64: 1, 256>}, {pipeline_mode = #tpu.pipeline_mode<synchronous>, transform_indices = @transform_10, window_bounds = array<i64: 256, 256>}, {pipeline_mode = #tpu.pipeline_mode<synchronous>, transform_indices = @transform_11, window_bounds = array<i64: 1, 256>}, {pipeline_mode = #tpu.pipeline_mode<synchronous>, transform_indices = @transform_12, window_bounds = array<i64: 256, 256>}, {pipeline_mode = #tpu.pipeline_mode<synchronous>, transform_indices = @transform_13, window_bounds = array<i64: 128, 256>}, {pipeline_mode = #tpu.pipeline_mode<synchronous>, transform_indices = @transform_14, window_bounds = array<i64: 1, 256>}, {pipeline_mode = #tpu.pipeline_mode<synchronous>, transform_indices = @transform_15, window_bounds = array<i64: 256, 256>}, {pipeline_mode = #tpu.pipeline_mode<synchronous>, transform_indices = @transform_16, window_bounds = array<i64: 1, 256>}, {pipeline_mode = #tpu.pipeline_mode<synchronous>, transform_indices = @transform_17, window_bounds = array<i64: 256, 256>}, {pipeline_mode = #tpu.pipeline_mode<synchronous>, transform_indices = @transform_18, window_bounds = array<i64: 1, 256>}, {pipeline_mode = #tpu.pipeline_mode<synchronous>, transform_indices = @transform_19, window_bounds = array<i64: 256, 256>}, {pipeline_mode = #tpu.pipeline_mode<synchronous>, transform_indices = @transform_20, window_bounds = array<i64: 1, 256>}, {pipeline_mode = #tpu.pipeline_mode<synchronous>, transform_indices = @transform_21, window_bounds = array<i64: 256, 128>}, {pipeline_mode = #tpu.pipeline_mode<synchronous>, transform_indices = @transform_22, window_bounds = array<i64: 1, 128>}, {pipeline_mode = #tpu.pipeline_mode<synchronous>, transform_indices = @transform_23, window_bounds = array<i64: 256, 128>}, {pipeline_mode = #tpu.pipeline_mode<synchronous>, transform_indices = @transform_24, window_bounds = array<i64: 128, 128>}, {pipeline_mode = #tpu.pipeline_mode<synchronous>, transform_indices = @transform_25, window_bounds = array<i64: 1, 128>}, {pipeline_mode = #tpu.pipeline_mode<synchronous>, transform_indices = @transform_26, window_bounds = array<i64: 128, 128>}, {pipeline_mode = #tpu.pipeline_mode<synchronous>, transform_indices = @transform_27, window_bounds = array<i64: 1, 128>}, {transform_indices = @transform_28, window_bounds = array<i64: 16, 128>}]} {
    %c0 = arith.constant 0 : index
    %c0_0 = arith.constant 0 : index
    %0 = vector.load %arg1[%c0, %c0_0] : memref<16x128xbf16, #tpu.memory_space<vmem>>, vector<16x128xbf16>
    %c0_1 = arith.constant 0 : index
    %c0_2 = arith.constant 0 : index
    %1 = vector.load %arg2[%c0_1, %c0_2] : memref<16x128xbf16, #tpu.memory_space<vmem>>, vector<16x128xbf16>
    %c0_3 = arith.constant 0 : index
    %c0_4 = arith.constant 0 : index
    %2 = vector.load %arg3[%c0_3, %c0_4] : memref<128x256xbf16, #tpu.memory_space<vmem>>, vector<128x256xbf16>
    %cst = arith.constant dense<0.000000e+00> : vector<16x256xf32>
    %3 = tpu.matmul %0, %2, %cst {dimension_numbers = #tpu.dot_dimension_numbers<[1], [0], [0], [1], [0, 0, 1, 1], [], []>} : vector<16x128xbf16>, vector<128x256xbf16>, vector<16x256xf32> -> vector<16x256xf32>
    %c0_5 = arith.constant 0 : index
    %c0_6 = arith.constant 0 : index
    %4 = vector.load %arg4[%c0_5, %c0_6] : memref<1x256xf32, #tpu.memory_space<vmem>>, vector<1x256xf32>
    %5 = vector.broadcast %4 : vector<1x256xf32> to vector<16x256xf32>
    %6 = arith.addf %3, %5 : vector<16x256xf32>
    %cst_7 = arith.constant 0.000000e+00 : f32
    %7 = vector.broadcast %cst_7 : f32 to vector<16x256xf32>
    %8 = arith.maximumf %6, %7 : vector<16x256xf32>
    %9 = arith.truncf %8 : vector<16x256xf32> to vector<16x256xbf16>
    %c0_8 = arith.constant 0 : index
    %c0_9 = arith.constant 0 : index
    %10 = vector.load %arg5[%c0_8, %c0_9] : memref<256x256xbf16, #tpu.memory_space<vmem>>, vector<256x256xbf16>
    %cst_10 = arith.constant dense<0.000000e+00> : vector<16x256xf32>
    %11 = tpu.matmul %9, %10, %cst_10 {dimension_numbers = #tpu.dot_dimension_numbers<[1], [0], [0], [1], [0, 0, 1, 1], [], []>} : vector<16x256xbf16>, vector<256x256xbf16>, vector<16x256xf32> -> vector<16x256xf32>
    %c0_11 = arith.constant 0 : index
    %c0_12 = arith.constant 0 : index
    %12 = vector.load %arg6[%c0_11, %c0_12] : memref<1x256xf32, #tpu.memory_space<vmem>>, vector<1x256xf32>
    %13 = vector.broadcast %12 : vector<1x256xf32> to vector<16x256xf32>
    %14 = arith.addf %11, %13 : vector<16x256xf32>
    %cst_13 = arith.constant 0.000000e+00 : f32
    %15 = vector.broadcast %cst_13 : f32 to vector<16x256xf32>
    %16 = arith.maximumf %14, %15 : vector<16x256xf32>
    %17 = arith.truncf %16 : vector<16x256xf32> to vector<16x256xbf16>
    %c0_14 = arith.constant 0 : index
    %c0_15 = arith.constant 0 : index
    %18 = vector.load %arg7[%c0_14, %c0_15] : memref<256x256xbf16, #tpu.memory_space<vmem>>, vector<256x256xbf16>
    %cst_16 = arith.constant dense<0.000000e+00> : vector<16x256xf32>
    %19 = tpu.matmul %17, %18, %cst_16 {dimension_numbers = #tpu.dot_dimension_numbers<[1], [0], [0], [1], [0, 0, 1, 1], [], []>} : vector<16x256xbf16>, vector<256x256xbf16>, vector<16x256xf32> -> vector<16x256xf32>
    %c0_17 = arith.constant 0 : index
    %c0_18 = arith.constant 0 : index
    %20 = vector.load %arg8[%c0_17, %c0_18] : memref<1x256xf32, #tpu.memory_space<vmem>>, vector<1x256xf32>
    %21 = vector.broadcast %20 : vector<1x256xf32> to vector<16x256xf32>
    %22 = arith.addf %19, %21 : vector<16x256xf32>
    %cst_19 = arith.constant 0.000000e+00 : f32
    %23 = vector.broadcast %cst_19 : f32 to vector<16x256xf32>
    %24 = arith.maximumf %22, %23 : vector<16x256xf32>
    %25 = arith.truncf %24 : vector<16x256xf32> to vector<16x256xbf16>
    %c0_20 = arith.constant 0 : index
    %c0_21 = arith.constant 0 : index
    %26 = vector.load %arg9[%c0_20, %c0_21] : memref<256x256xbf16, #tpu.memory_space<vmem>>, vector<256x256xbf16>
    %cst_22 = arith.constant dense<0.000000e+00> : vector<16x256xf32>
    %27 = tpu.matmul %25, %26, %cst_22 {dimension_numbers = #tpu.dot_dimension_numbers<[1], [0], [0], [1], [0, 0, 1, 1], [], []>} : vector<16x256xbf16>, vector<256x256xbf16>, vector<16x256xf32> -> vector<16x256xf32>
    %c0_23 = arith.constant 0 : index
    %c0_24 = arith.constant 0 : index
    %28 = vector.load %arg10[%c0_23, %c0_24] : memref<1x256xf32, #tpu.memory_space<vmem>>, vector<1x256xf32>
    %29 = vector.broadcast %28 : vector<1x256xf32> to vector<16x256xf32>
    %30 = arith.addf %27, %29 : vector<16x256xf32>
    %cst_25 = arith.constant 0.000000e+00 : f32
    %31 = vector.broadcast %cst_25 : f32 to vector<16x256xf32>
    %32 = arith.maximumf %30, %31 : vector<16x256xf32>
    %33 = arith.truncf %32 : vector<16x256xf32> to vector<16x256xbf16>
    %c0_26 = arith.constant 0 : index
    %c0_27 = arith.constant 0 : index
    %34 = vector.load %arg11[%c0_26, %c0_27] : memref<256x256xbf16, #tpu.memory_space<vmem>>, vector<256x256xbf16>
    %cst_28 = arith.constant dense<0.000000e+00> : vector<16x256xf32>
    %35 = tpu.matmul %33, %34, %cst_28 {dimension_numbers = #tpu.dot_dimension_numbers<[1], [0], [0], [1], [0, 0, 1, 1], [], []>} : vector<16x256xbf16>, vector<256x256xbf16>, vector<16x256xf32> -> vector<16x256xf32>
    %c0_29 = arith.constant 0 : index
    %c0_30 = arith.constant 0 : index
    %36 = vector.load %arg12[%c0_29, %c0_30] : memref<1x256xf32, #tpu.memory_space<vmem>>, vector<1x256xf32>
    %37 = vector.broadcast %36 : vector<1x256xf32> to vector<16x256xf32>
    %38 = arith.addf %35, %37 : vector<16x256xf32>
    %cst_31 = arith.constant 0.000000e+00 : f32
    %39 = vector.broadcast %cst_31 : f32 to vector<16x256xf32>
    %40 = arith.maximumf %38, %39 : vector<16x256xf32>
    %41 = arith.truncf %40 : vector<16x256xf32> to vector<16x256xbf16>
    %c0_32 = arith.constant 0 : index
    %c0_33 = arith.constant 0 : index
    %42 = vector.load %arg13[%c0_32, %c0_33] : memref<256x256xbf16, #tpu.memory_space<vmem>>, vector<256x256xbf16>
    %cst_34 = arith.constant dense<0.000000e+00> : vector<16x256xf32>
    %43 = tpu.matmul %41, %42, %cst_34 {dimension_numbers = #tpu.dot_dimension_numbers<[1], [0], [0], [1], [0, 0, 1, 1], [], []>} : vector<16x256xbf16>, vector<256x256xbf16>, vector<16x256xf32> -> vector<16x256xf32>
    %c0_35 = arith.constant 0 : index
    %c0_36 = arith.constant 0 : index
    %44 = vector.load %arg14[%c0_35, %c0_36] : memref<128x256xbf16, #tpu.memory_space<vmem>>, vector<128x256xbf16>
    %cst_37 = arith.constant dense<0.000000e+00> : vector<16x256xf32>
    %45 = tpu.matmul %0, %44, %cst_37 {dimension_numbers = #tpu.dot_dimension_numbers<[1], [0], [0], [1], [0, 0, 1, 1], [], []>} : vector<16x128xbf16>, vector<128x256xbf16>, vector<16x256xf32> -> vector<16x256xf32>
    %46 = arith.addf %43, %45 : vector<16x256xf32>
    %c0_38 = arith.constant 0 : index
    %c0_39 = arith.constant 0 : index
    %47 = vector.load %arg15[%c0_38, %c0_39] : memref<1x256xf32, #tpu.memory_space<vmem>>, vector<1x256xf32>
    %48 = vector.broadcast %47 : vector<1x256xf32> to vector<16x256xf32>
    %49 = arith.addf %46, %48 : vector<16x256xf32>
    %cst_40 = arith.constant 0.000000e+00 : f32
    %50 = vector.broadcast %cst_40 : f32 to vector<16x256xf32>
    %51 = arith.maximumf %49, %50 : vector<16x256xf32>
    %52 = arith.truncf %51 : vector<16x256xf32> to vector<16x256xbf16>
    %c0_41 = arith.constant 0 : index
    %c0_42 = arith.constant 0 : index
    %53 = vector.load %arg16[%c0_41, %c0_42] : memref<256x256xbf16, #tpu.memory_space<vmem>>, vector<256x256xbf16>
    %cst_43 = arith.constant dense<0.000000e+00> : vector<16x256xf32>
    %54 = tpu.matmul %52, %53, %cst_43 {dimension_numbers = #tpu.dot_dimension_numbers<[1], [0], [0], [1], [0, 0, 1, 1], [], []>} : vector<16x256xbf16>, vector<256x256xbf16>, vector<16x256xf32> -> vector<16x256xf32>
    %c0_44 = arith.constant 0 : index
    %c0_45 = arith.constant 0 : index
    %55 = vector.load %arg17[%c0_44, %c0_45] : memref<1x256xf32, #tpu.memory_space<vmem>>, vector<1x256xf32>
    %56 = vector.broadcast %55 : vector<1x256xf32> to vector<16x256xf32>
    %57 = arith.addf %54, %56 : vector<16x256xf32>
    %cst_46 = arith.constant 0.000000e+00 : f32
    %58 = vector.broadcast %cst_46 : f32 to vector<16x256xf32>
    %59 = arith.maximumf %57, %58 : vector<16x256xf32>
    %60 = arith.truncf %59 : vector<16x256xf32> to vector<16x256xbf16>
    %c0_47 = arith.constant 0 : index
    %c0_48 = arith.constant 0 : index
    %61 = vector.load %arg18[%c0_47, %c0_48] : memref<256x256xbf16, #tpu.memory_space<vmem>>, vector<256x256xbf16>
    %cst_49 = arith.constant dense<0.000000e+00> : vector<16x256xf32>
    %62 = tpu.matmul %60, %61, %cst_49 {dimension_numbers = #tpu.dot_dimension_numbers<[1], [0], [0], [1], [0, 0, 1, 1], [], []>} : vector<16x256xbf16>, vector<256x256xbf16>, vector<16x256xf32> -> vector<16x256xf32>
    %c0_50 = arith.constant 0 : index
    %c0_51 = arith.constant 0 : index
    %63 = vector.load %arg19[%c0_50, %c0_51] : memref<1x256xf32, #tpu.memory_space<vmem>>, vector<1x256xf32>
    %64 = vector.broadcast %63 : vector<1x256xf32> to vector<16x256xf32>
    %65 = arith.addf %62, %64 : vector<16x256xf32>
    %cst_52 = arith.constant 0.000000e+00 : f32
    %66 = vector.broadcast %cst_52 : f32 to vector<16x256xf32>
    %67 = arith.maximumf %65, %66 : vector<16x256xf32>
    %68 = arith.truncf %67 : vector<16x256xf32> to vector<16x256xbf16>
    %c0_53 = arith.constant 0 : index
    %c0_54 = arith.constant 0 : index
    %69 = vector.load %arg20[%c0_53, %c0_54] : memref<256x256xbf16, #tpu.memory_space<vmem>>, vector<256x256xbf16>
    %cst_55 = arith.constant dense<0.000000e+00> : vector<16x256xf32>
    %70 = tpu.matmul %68, %69, %cst_55 {dimension_numbers = #tpu.dot_dimension_numbers<[1], [0], [0], [1], [0, 0, 1, 1], [], []>} : vector<16x256xbf16>, vector<256x256xbf16>, vector<16x256xf32> -> vector<16x256xf32>
    %c0_56 = arith.constant 0 : index
    %c0_57 = arith.constant 0 : index
    %71 = vector.load %arg21[%c0_56, %c0_57] : memref<1x256xf32, #tpu.memory_space<vmem>>, vector<1x256xf32>
    %72 = vector.broadcast %71 : vector<1x256xf32> to vector<16x256xf32>
    %73 = arith.addf %70, %72 : vector<16x256xf32>
    %c0_58 = arith.constant 0 : index
    %c0_59 = arith.constant 0 : index
    %74 = vector.load %arg22[%c0_58, %c0_59] : memref<256x128xbf16, #tpu.memory_space<vmem>>, vector<256x128xbf16>
    %cst_60 = arith.constant dense<0.000000e+00> : vector<16x128xf32>
    %75 = tpu.matmul %68, %74, %cst_60 {dimension_numbers = #tpu.dot_dimension_numbers<[1], [0], [0], [1], [0, 0, 1, 1], [], []>} : vector<16x256xbf16>, vector<256x128xbf16>, vector<16x128xf32> -> vector<16x128xf32>
    %c0_61 = arith.constant 0 : index
    %c0_62 = arith.constant 0 : index
    %76 = vector.load %arg23[%c0_61, %c0_62] : memref<1x128xf32, #tpu.memory_space<vmem>>, vector<1x128xf32>
    %77 = vector.broadcast %76 : vector<1x128xf32> to vector<16x128xf32>
    %78 = arith.addf %75, %77 : vector<16x128xf32>
    %79 = arith.truncf %73 : vector<16x256xf32> to vector<16x256xbf16>
    %c0_63 = arith.constant 0 : index
    %c0_64 = arith.constant 0 : index
    %80 = vector.load %arg24[%c0_63, %c0_64] : memref<256x128xbf16, #tpu.memory_space<vmem>>, vector<256x128xbf16>
    %cst_65 = arith.constant dense<0.000000e+00> : vector<16x128xf32>
    %81 = tpu.matmul %79, %80, %cst_65 {dimension_numbers = #tpu.dot_dimension_numbers<[1], [0], [0], [1], [0, 0, 1, 1], [], []>} : vector<16x256xbf16>, vector<256x128xbf16>, vector<16x128xf32> -> vector<16x128xf32>
    %c0_66 = arith.constant 0 : index
    %c0_67 = arith.constant 0 : index
    %82 = vector.load %arg25[%c0_66, %c0_67] : memref<128x128xbf16, #tpu.memory_space<vmem>>, vector<128x128xbf16>
    %cst_68 = arith.constant dense<0.000000e+00> : vector<16x128xf32>
    %83 = tpu.matmul %1, %82, %cst_68 {dimension_numbers = #tpu.dot_dimension_numbers<[1], [0], [0], [1], [0, 0, 1, 1], [], []>} : vector<16x128xbf16>, vector<128x128xbf16>, vector<16x128xf32> -> vector<16x128xf32>
    %84 = arith.addf %81, %83 : vector<16x128xf32>
    %c0_69 = arith.constant 0 : index
    %c0_70 = arith.constant 0 : index
    %85 = vector.load %arg26[%c0_69, %c0_70] : memref<1x128xf32, #tpu.memory_space<vmem>>, vector<1x128xf32>
    %86 = vector.broadcast %85 : vector<1x128xf32> to vector<16x128xf32>
    %87 = arith.addf %84, %86 : vector<16x128xf32>
    %cst_71 = arith.constant 0.000000e+00 : f32
    %88 = vector.broadcast %cst_71 : f32 to vector<16x128xf32>
    %89 = arith.maximumf %87, %88 : vector<16x128xf32>
    %90 = arith.truncf %89 : vector<16x128xf32> to vector<16x128xbf16>
    %c0_72 = arith.constant 0 : index
    %c0_73 = arith.constant 0 : index
    %91 = vector.load %arg27[%c0_72, %c0_73] : memref<128x128xbf16, #tpu.memory_space<vmem>>, vector<128x128xbf16>
    %cst_74 = arith.constant dense<0.000000e+00> : vector<16x128xf32>
    %92 = tpu.matmul %90, %91, %cst_74 {dimension_numbers = #tpu.dot_dimension_numbers<[1], [0], [0], [1], [0, 0, 1, 1], [], []>} : vector<16x128xbf16>, vector<128x128xbf16>, vector<16x128xf32> -> vector<16x128xf32>
    %c0_75 = arith.constant 0 : index
    %c0_76 = arith.constant 0 : index
    %93 = vector.load %arg28[%c0_75, %c0_76] : memref<1x128xf32, #tpu.memory_space<vmem>>, vector<1x128xf32>
    %94 = vector.broadcast %93 : vector<1x128xf32> to vector<16x128xf32>
    %95 = arith.addf %92, %94 : vector<16x128xf32>
    %96 = tpu.iota {dimensions = array<i32: 1>} : vector<16x128xi32>
    %c3_i32 = arith.constant 3 : i32
    %97 = vector.broadcast %c3_i32 : i32 to vector<16x128xi32>
    %98 = arith.cmpi slt, %96, %97 : vector<16x128xi32>
    %99 = arith.negf %95 : vector<16x128xf32>
    %100 = math.exp %99 : vector<16x128xf32>
    %cst_77 = arith.constant 1.000000e+00 : f32
    %101 = vector.broadcast %cst_77 : f32 to vector<16x128xf32>
    %102 = arith.addf %101, %100 : vector<16x128xf32>
    %103 = arith.divf %101, %102 : vector<16x128xf32>
    %cst_78 = arith.constant 0.000000e+00 : f32
    %104 = vector.broadcast %cst_78 : f32 to vector<16x128xf32>
    %105 = arith.maximumf %78, %104 : vector<16x128xf32>
    %106 = arith.select %98, %103, %105 : vector<16x128xi1>, vector<16x128xf32>
    %c0_79 = arith.constant 0 : index
    %c0_80 = arith.constant 0 : index
    %107 = vector.load %arg29[%c0_79, %c0_80] : memref<16x128xf32, #tpu.memory_space<vmem>>, vector<16x128xf32>
    tpu.vector_store %arg29[%c0_79, %c0_80], %106 {strides = array<i32>} : memref<16x128xf32, #tpu.memory_space<vmem>>, vector<16x128xf32>,
    return
  }
  func.func @transform_0(%arg0: i32) -> (i32, i32) {
    %c0_i32 = arith.constant 0 : i32
    %c0_i32_0 = arith.constant 0 : i32
    return %arg0, %c0_i32 : i32, i32
  }
  func.func @transform_1(%arg0: i32) -> (i32, i32) {
    %c0_i32 = arith.constant 0 : i32
    %c0_i32_0 = arith.constant 0 : i32
    return %arg0, %c0_i32 : i32, i32
  }
  func.func @transform_2(%arg0: i32) -> (i32, i32) {
    %c0_i32 = arith.constant 0 : i32
    %c0_i32_0 = arith.constant 0 : i32
    %c0_i32_1 = arith.constant 0 : i32
    return %c0_i32, %c0_i32_0 : i32, i32
  }
  func.func @transform_3(%arg0: i32) -> (i32, i32) {
    %c0_i32 = arith.constant 0 : i32
    %c0_i32_0 = arith.constant 0 : i32
    %c0_i32_1 = arith.constant 0 : i32
    return %c0_i32, %c0_i32_0 : i32, i32
  }
  func.func @transform_4(%arg0: i32) -> (i32, i32) {
    %c0_i32 = arith.constant 0 : i32
    %c0_i32_0 = arith.constant 0 : i32
    %c0_i32_1 = arith.constant 0 : i32
    return %c0_i32, %c0_i32_0 : i32, i32
  }
  func.func @transform_5(%arg0: i32) -> (i32, i32) {
    %c0_i32 = arith.constant 0 : i32
    %c0_i32_0 = arith.constant 0 : i32
    %c0_i32_1 = arith.constant 0 : i32
    return %c0_i32, %c0_i32_0 : i32, i32
  }
  func.func @transform_6(%arg0: i32) -> (i32, i32) {
    %c0_i32 = arith.constant 0 : i32
    %c0_i32_0 = arith.constant 0 : i32
    %c0_i32_1 = arith.constant 0 : i32
    return %c0_i32, %c0_i32_0 : i32, i32
  }
  func.func @transform_7(%arg0: i32) -> (i32, i32) {
    %c0_i32 = arith.constant 0 : i32
    %c0_i32_0 = arith.constant 0 : i32
    %c0_i32_1 = arith.constant 0 : i32
    return %c0_i32, %c0_i32_0 : i32, i32
  }
  func.func @transform_8(%arg0: i32) -> (i32, i32) {
    %c0_i32 = arith.constant 0 : i32
    %c0_i32_0 = arith.constant 0 : i32
    %c0_i32_1 = arith.constant 0 : i32
    return %c0_i32, %c0_i32_0 : i32, i32
  }
  func.func @transform_9(%arg0: i32) -> (i32, i32) {
    %c0_i32 = arith.constant 0 : i32
    %c0_i32_0 = arith.constant 0 : i32
    %c0_i32_1 = arith.constant 0 : i32
    return %c0_i32, %c0_i32_0 : i32, i32
  }
  func.func @transform_10(%arg0: i32) -> (i32, i32) {
    %c0_i32 = arith.constant 0 : i32
    %c0_i32_0 = arith.constant 0 : i32
    %c0_i32_1 = arith.constant 0 : i32
    return %c0_i32, %c0_i32_0 : i32, i32
  }
  func.func @transform_11(%arg0: i32) -> (i32, i32) {
    %c0_i32 = arith.constant 0 : i32
    %c0_i32_0 = arith.constant 0 : i32
    %c0_i32_1 = arith.constant 0 : i32
    return %c0_i32, %c0_i32_0 : i32, i32
  }
  func.func @transform_12(%arg0: i32) -> (i32, i32) {
    %c0_i32 = arith.constant 0 : i32
    %c0_i32_0 = arith.constant 0 : i32
    %c0_i32_1 = arith.constant 0 : i32
    return %c0_i32, %c0_i32_0 : i32, i32
  }
  func.func @transform_13(%arg0: i32) -> (i32, i32) {
    %c0_i32 = arith.constant 0 : i32
    %c0_i32_0 = arith.constant 0 : i32
    %c0_i32_1 = arith.constant 0 : i32
    return %c0_i32, %c0_i32_0 : i32, i32
  }
  func.func @transform_14(%arg0: i32) -> (i32, i32) {
    %c0_i32 = arith.constant 0 : i32
    %c0_i32_0 = arith.constant 0 : i32
    %c0_i32_1 = arith.constant 0 : i32
    return %c0_i32, %c0_i32_0 : i32, i32
  }
  func.func @transform_15(%arg0: i32) -> (i32, i32) {
    %c0_i32 = arith.constant 0 : i32
    %c0_i32_0 = arith.constant 0 : i32
    %c0_i32_1 = arith.constant 0 : i32
    return %c0_i32, %c0_i32_0 : i32, i32
  }
  func.func @transform_16(%arg0: i32) -> (i32, i32) {
    %c0_i32 = arith.constant 0 : i32
    %c0_i32_0 = arith.constant 0 : i32
    %c0_i32_1 = arith.constant 0 : i32
    return %c0_i32, %c0_i32_0 : i32, i32
  }
  func.func @transform_17(%arg0: i32) -> (i32, i32) {
    %c0_i32 = arith.constant 0 : i32
    %c0_i32_0 = arith.constant 0 : i32
    %c0_i32_1 = arith.constant 0 : i32
    return %c0_i32, %c0_i32_0 : i32, i32
  }
  func.func @transform_18(%arg0: i32) -> (i32, i32) {
    %c0_i32 = arith.constant 0 : i32
    %c0_i32_0 = arith.constant 0 : i32
    %c0_i32_1 = arith.constant 0 : i32
    return %c0_i32, %c0_i32_0 : i32, i32
  }
  func.func @transform_19(%arg0: i32) -> (i32, i32) {
    %c0_i32 = arith.constant 0 : i32
    %c0_i32_0 = arith.constant 0 : i32
    %c0_i32_1 = arith.constant 0 : i32
    return %c0_i32, %c0_i32_0 : i32, i32
  }
  func.func @transform_20(%arg0: i32) -> (i32, i32) {
    %c0_i32 = arith.constant 0 : i32
    %c0_i32_0 = arith.constant 0 : i32
    %c0_i32_1 = arith.constant 0 : i32
    return %c0_i32, %c0_i32_0 : i32, i32
  }
  func.func @transform_21(%arg0: i32) -> (i32, i32) {
    %c0_i32 = arith.constant 0 : i32
    %c0_i32_0 = arith.constant 0 : i32
    %c0_i32_1 = arith.constant 0 : i32
    return %c0_i32, %c0_i32_0 : i32, i32
  }
  func.func @transform_22(%arg0: i32) -> (i32, i32) {
    %c0_i32 = arith.constant 0 : i32
    %c0_i32_0 = arith.constant 0 : i32
    %c0_i32_1 = arith.constant 0 : i32
    return %c0_i32, %c0_i32_0 : i32, i32
  }
  func.func @transform_23(%arg0: i32) -> (i32, i32) {
    %c0_i32 = arith.constant 0 : i32
    %c0_i32_0 = arith.constant 0 : i32
    %c0_i32_1 = arith.constant 0 : i32
    return %c0_i32, %c0_i32_0 : i32, i32
  }
  func.func @transform_24(%arg0: i32) -> (i32, i32) {
    %c0_i32 = arith.constant 0 : i32
    %c0_i32_0 = arith.constant 0 : i32
    %c0_i32_1 = arith.constant 0 : i32
    return %c0_i32, %c0_i32_0 : i32, i32
  }
  func.func @transform_25(%arg0: i32) -> (i32, i32) {
    %c0_i32 = arith.constant 0 : i32
    %c0_i32_0 = arith.constant 0 : i32
    %c0_i32_1 = arith.constant 0 : i32
    return %c0_i32, %c0_i32_0 : i32, i32
  }
  func.func @transform_26(%arg0: i32) -> (i32, i32) {
    %c0_i32 = arith.constant 0 : i32
    %c0_i32_0 = arith.constant 0 : i32
    %c0_i32_1 = arith.constant 0 : i32
    return %c0_i32, %c0_i32_0 : i32, i32
  }
  func.func @transform_27(%arg0: i32) -> (i32, i32) {
    %c0_i32 = arith.constant 0 : i32
    %c0_i32_0 = arith.constant 0 : i32
    %c0_i32_1 = arith.constant 0 : i32
    return %c0_i32, %c0_i32_0 : i32, i32
  }
  func.func @transform_28(%arg0: i32) -> (i32, i32) {
    %c0_i32 = arith.constant 0 : i32
    %c0_i32_0 = arith.constant 0 : i32
    return %arg0, %c0_i32 : i32, i32
  }
}

</mosaic_0001>

<bundles_post_ra>
// kernel: nerf_mlp_forward.1
= control target key start
LH: loop header
LB: loop body
LE: loop exit
PB: predicated region body
PF: predicated region fallthrough
CT: control target
= control target key end

     0   :  { %s5393_s0 = inlined_call_operand.vmem [shape: bf16[16,128], index: 0, kind: input, shape index: {}]   ;;  %s5394_s1 = inlined_call_operand.vmem [shape: bf16[16,128], index: 1, kind: input, shape index: {}]   ;;  %s5395_s2 = inlined_call_operand.hbm [shape: bf16[128,256], index: 2, kind: input, shape index: {}]   ;;  %s5396_s3 = inlined_call_operand.vmem [shape: f32[1,256], index: 3, kind: input, shape index: {}]   ;;  %s5397_s4 = inlined_call_operand.vmem [shape: bf16[256,256], index: 4, kind: input, shape index: {}]   ;;  %s5398_s5 = inlined_call_operand.hbm [shape: f32[1,256], index: 5, kind: input, shape index: {}]   ;;  %s5399_s6 = inlined_call_operand.vmem [shape: bf16[256,256], index: 6, kind: input, shape index: {}]   ;;  %s5400_s7 = inlined_call_operand.hbm [shape: f32[1,256], index: 7, kind: input, shape index: {}]   ;;  %s5401_s8 = inlined_call_operand.hbm [shape: bf16[256,256], index: 8, kind: input, shape index: {}]   ;;  %s5402_s9 = inlined_call_operand.hbm [shape: f32[1,256], index: 9, kind: input, shape index: {}]   ;;  %s5403_s10 = inlined_call_operand.hbm [shape: bf16[256,256], index: 10, kind: input, shape index: {}]   ;;  %s5404_s11 = inlined_call_operand.hbm [shape: f32[1,256], index: 11, kind: input, shape index: {}]   ;;  %s5405_s12 = inlined_call_operand.vmem [shape: bf16[256,256], index: 12, kind: input, shape index: {}]   ;;  %s5406_s13 = inlined_call_operand.hbm [shape: bf16[128,256], index: 13, kind: input, shape index: {}]   ;;  %s5407_s14 = inlined_call_operand.vmem [shape: f32[1,256], index: 14, kind: input, shape index: {}]   ;;  %s5408_s15 = inlined_call_operand.hbm [shape: bf16[256,256], index: 15, kind: input, shape index: {}]   ;;  %s5409_s16 = inlined_call_operand.vmem [shape: f32[1,256], index: 16, kind: input, shape index: {}]   ;;  %s5410_s17 = inlined_call_operand.hbm [shape: bf16[256,256], index: 17, kind: input, shape index: {}]   ;;  %s5411_s18 = inlined_call_operand.vmem [shape: f32[1,256], index: 18, kind: input, shape index: {}]   ;;  %s5412_s19 = inlined_call_operand.hbm [shape: bf16[256,256], index: 19, kind: input, shape index: {}]   ;;  %s5413_s20 = inlined_call_operand.vmem [shape: f32[1,256], index: 20, kind: input, shape index: {}]   ;;  %s5414_s21 = inlined_call_operand.hbm [shape: bf16[256,128], index: 21, kind: input, shape index: {}]   ;;  %s5415_s22 = inlined_call_operand.vmem [shape: f32[1,128], index: 22, kind: input, shape index: {}]   ;;  %s5416_s23 = inlined_call_operand.hbm [shape: bf16[256,128], index: 23, kind: input, shape index: {}]   ;;  %s5417_s24 = inlined_call_operand.hbm [shape: bf16[128,128], index: 24, kind: input, shape index: {}]   ;;  %s5418_s25 = inlined_call_operand.hbm [shape: f32[1,128], index: 25, kind: input, shape index: {}]   ;;  %s5419_s26 = inlined_call_operand.hbm [shape: bf16[128,128], index: 26, kind: input, shape index: {}]   ;;  %s5420_s27 = inlined_call_operand.hbm [shape: f32[1,128], index: 27, kind: input, shape index: {}]   ;;  %s5421_s28 = inlined_call_operand.vmem [shape: f32[16,128], index: 28, kind: output, shape index: {}]  }
   0x1   :  { %5434 = sst [smem:[#allocation37_spill]] %s5393_s0 }
   0x2   :  { %5435 = sst [smem:[#allocation38_spill]] %s5394_s1 }
   0x3   :  { %5436 = sst [smem:[#allocation39_spill]] %s5395_s2 }
   0x4   :  { %5437 = sst [smem:[#allocation40_spill]] %s5396_s3 }
   0x5   :  { %5438 = sst [smem:[#allocation41_spill]] %s5397_s4 }
   0x6   :  { %5439 = sst [smem:[#allocation42_spill]] %s5398_s5 }
   0x7   :  { %5440 = sst [smem:[#allocation43_spill]] %s5399_s6 }
   0x8   :  { %5441 = sst [smem:[#allocation44_spill]] %s5400_s7 }
   0x9   :  { %5442 = sst [smem:[#allocation45_spill]] %s5401_s8 }
   0xa   :  { %5443 = sst [smem:[#allocation46_spill]] %s5402_s9 }
   0xb   :  { %5444 = sst [smem:[#allocation47_spill]] %s5403_s10 }
   0xc   :  { %5445 = sst [smem:[#allocation48_spill]] %s5404_s11 }
   0xd   :  { %5446 = sst [smem:[#allocation49_spill]] %s5405_s12 }
   0xe   :  { %5447 = sst [smem:[#allocation50_spill]] %s5415_s22 }
   0xf   :  { %5448 = sst [smem:[#allocation51_spill]] %s5421_s28 }
  0x10   :  { %33 = vsyncpa [#allocation3], 0 }
  0x11   :  { %34 = vsyncpa [#allocation5], 0 }
  0x12   :  { %35 = vsyncpa [#allocation8], 0 }
  0x13   :  { %36 = vsyncpa [#allocation11], 0 }
  0x14   :  { %37 = vsyncpa [#allocation14], 0 }
  0x15   :  { %38 = vsyncpa [#allocation17], 0 }
  0x16   :  { %39 = vsyncpa [#allocation20], 0 }
  0x17   :  { %40 = vsyncpa [#allocation23], 0 }
  0x18   :  { %41 = vsyncpa [#allocation26], 0  ;;  %s4608_s8 = smov [#allocation4]   ;;  %s5449_s3 = sld [smem:[#allocation42_spill]] }
  0x19   :  { %s68_s5 = sshll.u32 %s4608_s8, 4  ;;  %s69_s5 = int_to_ptr.vmem [resolvable:$true] %s68_s5 }
  0x1e   :  { %s4216_s6 = scalar_lea.hbm %s5449_s3, 32 }
  0x1f   :  { %p4217_p0 = scmp.ne.s32.totalorder %s5449_s3, %s4216_s6  ;;  %p4220_p1 = scmp.lt.u32.totalorder %s4216_s6, %s5449_s3 }
  0x21   :  { %p4222_p2 = pnand %p4220_p1, %p4217_p0 }
  0x23   :  { %4225 = shalt.err (!%p4222_p2)
}
  0x24   :  { %s4226_s2 = scalar_lea.vmem %s69_s5, 32  ;;  %p4231_p4 = scmp.lt.s32.totalorder %s69_s5, %s69_s5 }
  0x25   :  { %p4227_p3 = scmp.ne.s32.totalorder %s69_s5, %s4226_s2  ;;  %p4232_p5 = scmp.lt.s32.totalorder %s4226_s2, %s4226_s2 }
  0x27   :  { %p4233_p6 = por %p4232_p5, %p4231_p4 }
  0x29   :  { %p4234_p7 = pnand %p4233_p6, %p4227_p3 }
  0x2b   :  { %4237 = shalt.err (!%p4234_p7)
}
  0x2c   :  { %71 = dma.hbm_to_vmem [thread:$0]  %s5449_s3, 32, %s69_s5, [#allocation5]  }
  0x2d   :  { %s4609_s1 = smov [#allocation7]   ;;  %s4610_s8 = smov [#allocation10]  }
  0x2e   :  { %s89_s4 = sshll.u32 %s4609_s1, 4  ;;  %s111_s9 = sshll.u32 %s4610_s8, 4  ;;  %s90_s4 = int_to_ptr.vmem [resolvable:$true] %s89_s4  ;;  %s112_s9 = int_to_ptr.vmem [resolvable:$true] %s111_s9 }
  0x2f   :  { %s5450_s10 = sld [smem:[#allocation45_spill]] }
  0x35   :  { %s4238_s0 = scalar_lea.hbm %s5450_s10, 4096 }
  0x36   :  { %p4239_p8 = scmp.ne.s32.totalorder %s5450_s10, %s4238_s0  ;;  %p4242_p9 = scmp.lt.u32.totalorder %s4238_s0, %s5450_s10 }
  0x38   :  { %p4244_p10 = pnand %p4242_p9, %p4239_p8 }
  0x3a   :  { %4247 = shalt.err (!%p4244_p10)
}
  0x3b   :  { %s4248_s5 = scalar_lea.vmem %s90_s4, 4096  ;;  %p4253_p12 = scmp.lt.s32.totalorder %s90_s4, %s90_s4 }
  0x3c   :  { %p4249_p11 = scmp.ne.s32.totalorder %s90_s4, %s4248_s5  ;;  %p4254_p13 = scmp.lt.s32.totalorder %s4248_s5, %s4248_s5 }
  0x3e   :  { %p4255_p0 = por %p4254_p13, %p4253_p12 }
  0x40   :  { %p4256_p1 = pnand %p4255_p0, %p4249_p11 }
  0x42   :  { %4259 = shalt.err (!%p4256_p1)
}
  0x43   :  { %s4611_s3 = smov 128   ;;  %s4612_s7 = smov 8  }
  0x44   :  { %95 = dma.hbm_to_vmem [thread:$0]  %s5450_s10, 4096, %s90_s4, [#allocation8], %s4611_s3, %s4611_s3, %s4612_s7  }
  0x45   :  { %s5451_s30 = sld [smem:[#allocation47_spill]] }
  0x4b   :  { %s4260_s6 = scalar_lea.hbm %s5451_s30, 4096 }
  0x4c   :  { %p4261_p2 = scmp.ne.s32.totalorder %s5451_s30, %s4260_s6  ;;  %p4264_p3 = scmp.lt.u32.totalorder %s4260_s6, %s5451_s30 }
  0x4e   :  { %p4266_p4 = pnand %p4264_p3, %p4261_p2 }
  0x50   :  { %4269 = shalt.err (!%p4266_p4)
}
  0x51   :  { %s4270_s5 = scalar_lea.vmem %s112_s9, 4096  ;;  %p4275_p6 = scmp.lt.s32.totalorder %s112_s9, %s112_s9 }
  0x52   :  { %p4271_p5 = scmp.ne.s32.totalorder %s112_s9, %s4270_s5  ;;  %p4276_p7 = scmp.lt.s32.totalorder %s4270_s5, %s4270_s5 }
  0x54   :  { %p4277_p8 = por %p4276_p7, %p4275_p6 }
  0x56   :  { %p4278_p9 = pnand %p4277_p8, %p4271_p5 }
  0x58   :  { %4281 = shalt.err (!%p4278_p9)
}
  0x59   :  { %117 = dma.hbm_to_vmem [thread:$0]  %s5451_s30, 4096, %s112_s9, [#allocation11], %s4611_s3, %s4611_s3, %s4612_s7  }
  0x5a   :  { %s4613_s12 = smov [#allocation13]   ;;  %s4614_s28 = smov [#allocation16]  }
  0x5b   :  { %s135_s1 = sshll.u32 %s4613_s12, 4  ;;  %s163_s8 = sshll.u32 %s4614_s28, 4  ;;  %s136_s1 = int_to_ptr.vmem [resolvable:$true] %s135_s1  ;;  %s164_s8 = int_to_ptr.vmem [resolvable:$true] %s163_s8 }
  0x5c   :  { %s4282_s11 = scalar_lea.hbm %s5406_s13, 2048 }
  0x5d   :  { %p4283_p10 = scmp.ne.s32.totalorder %s5406_s13, %s4282_s11  ;;  %p4286_p11 = scmp.lt.u32.totalorder %s4282_s11, %s5406_s13 }
  0x5f   :  { %p4288_p12 = pnand %p4286_p11, %p4283_p10 }
  0x61   :  { %4291 = shalt.err (!%p4288_p12)
}
  0x62   :  { %s4292_s9 = scalar_lea.vmem %s136_s1, 2048  ;;  %p4297_p0 = scmp.lt.s32.totalorder %s136_s1, %s136_s1 }
  0x63   :  { %p4293_p13 = scmp.ne.s32.totalorder %s136_s1, %s4292_s9  ;;  %p4298_p1 = scmp.lt.s32.totalorder %s4292_s9, %s4292_s9 }
  0x65   :  { %p4299_p2 = por %p4298_p1, %p4297_p0 }
  0x67   :  { %p4300_p3 = pnand %p4299_p2, %p4293_p13 }
  0x69   :  { %4303 = shalt.err (!%p4300_p3)
}
  0x6a   :  { %141 = dma.hbm_to_vmem [thread:$0]  %s5406_s13, 2048, %s136_s1, [#allocation14], %s4611_s3, %s4611_s3, %s4612_s7  }
  0x6b   :  { %s4304_s12 = scalar_lea.hbm %s5410_s17, 4096 }
  0x6c   :  { %p4305_p4 = scmp.ne.s32.totalorder %s5410_s17, %s4304_s12  ;;  %p4308_p5 = scmp.lt.u32.totalorder %s4304_s12, %s5410_s17 }
  0x6e   :  { %p4310_p6 = pnand %p4308_p5, %p4305_p4 }
  0x70   :  { %4313 = shalt.err (!%p4310_p6)
}
  0x71   :  { %s4314_s29 = scalar_lea.vmem %s164_s8, 4096  ;;  %p4319_p8 = scmp.lt.s32.totalorder %s164_s8, %s164_s8 }
  0x72   :  { %p4315_p7 = scmp.ne.s32.totalorder %s164_s8, %s4314_s29  ;;  %p4320_p9 = scmp.lt.s32.totalorder %s4314_s29, %s4314_s29 }
  0x74   :  { %p4321_p10 = por %p4320_p9, %p4319_p8 }
  0x76   :  { %p4322_p11 = pnand %p4321_p10, %p4315_p7 }
  0x78   :  { %4325 = shalt.err (!%p4322_p11)
}
  0x79   :  { %169 = dma.hbm_to_vmem [thread:$0]  %s5410_s17, 4096, %s164_s8, [#allocation17], %s4611_s3, %s4611_s3, %s4612_s7  }
  0x7a   :  { %s4615_s2 = smov [#allocation19]   ;;  %s4326_s4 = scalar_lea.hbm %s5414_s21, 2048 }
  0x7b   :  { %s191_s5 = sshll.u32 %s4615_s2, 4  ;;  %p4327_p12 = scmp.ne.s32.totalorder %s5414_s21, %s4326_s4  ;;  %s192_s5 = int_to_ptr.vmem [resolvable:$true] %s191_s5 }
  0x7c   :  { %p4330_p13 = scmp.lt.u32.totalorder %s4326_s4, %s5414_s21 }
  0x7e   :  { %p4332_p0 = pnand %p4330_p13, %p4327_p12 }
  0x80   :  { %4335 = shalt.err (!%p4332_p0)
}
  0x81   :  { %s4336_s6 = scalar_lea.vmem %s192_s5, 2048  ;;  %p4341_p2 = scmp.lt.s32.totalorder %s192_s5, %s192_s5 }
  0x82   :  { %p4337_p1 = scmp.ne.s32.totalorder %s192_s5, %s4336_s6  ;;  %p4342_p3 = scmp.lt.s32.totalorder %s4336_s6, %s4336_s6 }
  0x84   :  { %p4343_p4 = por %p4342_p3, %p4341_p2 }
  0x86   :  { %p4344_p5 = pnand %p4343_p4, %p4337_p1 }
  0x88   :  { %4347 = shalt.err (!%p4344_p5)
}
  0x89   :  { %s4616_s17 = smov 64   ;;  %s4617_s8 = smov 4  }
  0x8a   :  { %197 = dma.hbm_to_vmem [thread:$0]  %s5414_s21, 2048, %s192_s5, [#allocation20], %s4616_s17, %s4616_s17, %s4617_s8  }
  0x8b   :  { %s4618_s29 = smov [#allocation22]   ;;  %s4619_s1 = smov [#allocation25]  }
  0x8c   :  { %s217_s13 = sshll.u32 %s4618_s29, 4  ;;  %s239_s2 = sshll.u32 %s4619_s1, 4  ;;  %s218_s13 = int_to_ptr.vmem [resolvable:$true] %s217_s13  ;;  %s4864_s2 = int_to_ptr.vmem [resolvable:$true] %s239_s2 }
  0x8d   :  { %s4348_s4 = scalar_lea.hbm %s5417_s24, 1024 }
  0x8e   :  { %p4349_p6 = scmp.ne.s32.totalorder %s5417_s24, %s4348_s4  ;;  %p4352_p7 = scmp.lt.u32.totalorder %s4348_s4, %s5417_s24 }
  0x90   :  { %p4354_p8 = pnand %p4352_p7, %p4349_p6 }
  0x92   :  { %4357 = shalt.err (!%p4354_p8)
}
  0x93   :  { %s4358_s21 = scalar_lea.vmem %s218_s13, 1024  ;;  %p4363_p10 = scmp.lt.s32.totalorder %s218_s13, %s218_s13 }
  0x94   :  { %p4359_p9 = scmp.ne.s32.totalorder %s218_s13, %s4358_s21  ;;  %p4364_p11 = scmp.lt.s32.totalorder %s4358_s21, %s4358_s21 }
  0x96   :  { %p4365_p12 = por %p4364_p11, %p4363_p10 }
  0x98   :  { %p4366_p13 = pnand %p4365_p12, %p4359_p9 }
  0x9a   :  { %4369 = shalt.err (!%p4366_p13)
}
  0x9b   :  { %223 = dma.hbm_to_vmem [thread:$0]  %s5417_s24, 1024, %s218_s13, [#allocation23], %s4616_s17, %s4616_s17, %s4617_s8  }
  0x9c   :  { %s4370_s29 = scalar_lea.hbm %s5419_s26, 1024 }
  0x9d   :  { %p4371_p0 = scmp.ne.s32.totalorder %s5419_s26, %s4370_s29  ;;  %p4374_p1 = scmp.lt.u32.totalorder %s4370_s29, %s5419_s26 }
  0x9f   :  { %p4376_p2 = pnand %p4374_p1, %p4371_p0 }
  0xa1   :  { %4379 = shalt.err (!%p4376_p2)
}
  0xa2   :  { %s4380_s10 = scalar_lea.vmem %s4864_s2, 1024  ;;  %p4385_p4 = scmp.lt.s32.totalorder %s4864_s2, %s4864_s2 }
  0xa3   :  { %p4381_p3 = scmp.ne.s32.totalorder %s4864_s2, %s4380_s10  ;;  %p4386_p5 = scmp.lt.s32.totalorder %s4380_s10, %s4380_s10 }
  0xa5   :  { %p4387_p6 = por %p4386_p5, %p4385_p4 }
  0xa7   :  { %p4388_p7 = pnand %p4387_p6, %p4381_p3 }
  0xa9   :  { %4391 = shalt.err (!%p4388_p7)
}
  0xaa   :  { %245 = dma.hbm_to_vmem [thread:$0]  %s5419_s26, 1024, %s4864_s2, [#allocation26], %s4616_s17, %s4616_s17, %s4617_s8  }
  0xab   :  { %s4620_s22 = smov [#allocation2]   ;;  %s4621_s28 = smov [#allocation6]  }
  0xac   :  { %s51_s12 = sshll.u32 %s4620_s22, 4  ;;  %s80_s21 = sshll.u32 %s4621_s28, 4  ;;  %s52_s12 = int_to_ptr.vmem [resolvable:$true] %s51_s12  ;;  %s81_s21 = int_to_ptr.vmem [resolvable:$true] %s80_s21 }
  0xad   :  { %s5452_s0 = sld [smem:[#allocation39_spill]] }
  0xb3   :  { %s4392_s11 = scalar_lea.hbm %s5452_s0, 2048 }
  0xb4   :  { %p4393_p8 = scmp.ne.s32.totalorder %s5452_s0, %s4392_s11  ;;  %p4396_p9 = scmp.lt.u32.totalorder %s4392_s11, %s5452_s0 }
  0xb6   :  { %p4398_p10 = pnand %p4396_p9, %p4393_p8 }
  0xb8   :  { %4401 = shalt.err (!%p4398_p10)
}
  0xb9   :  { %s4402_s26 = scalar_lea.vmem %s52_s12, 2048  ;;  %p4407_p12 = scmp.lt.s32.totalorder %s52_s12, %s52_s12 }
  0xba   :  { %p4403_p11 = scmp.ne.s32.totalorder %s52_s12, %s4402_s26  ;;  %p4408_p13 = scmp.lt.s32.totalorder %s4402_s26, %s4402_s26 }
  0xbc   :  { %p4409_p0 = por %p4408_p13, %p4407_p12 }
  0xbe   :  { %p4410_p1 = pnand %p4409_p0, %p4403_p11 }
  0xc0   :  { %4413 = shalt.err (!%p4410_p1)
}
  0xc1   :  { %57 = dma.hbm_to_vmem [thread:$0]  %s5452_s0, 2048, %s52_s12, [#allocation3], %s4611_s3, %s4611_s3, %s4612_s7  }
  0xc2   :  { %s5453_s13 = sld [smem:[#allocation44_spill]] }
  0xc8   :  { %s4414_s22 = scalar_lea.hbm %s5453_s13, 32 }
  0xc9   :  { %p4415_p2 = scmp.ne.s32.totalorder %s5453_s13, %s4414_s22  ;;  %p4418_p3 = scmp.lt.u32.totalorder %s4414_s22, %s5453_s13 }
  0xcb   :  { %p4420_p4 = pnand %p4418_p3, %p4415_p2 }
  0xcd   :  { %4423 = shalt.err (!%p4420_p4)
}
  0xce   :  { %s4424_s29 = scalar_lea.vmem %s81_s21, 32  ;;  %p4429_p6 = scmp.lt.s32.totalorder %s81_s21, %s81_s21 }
  0xcf   :  { %p4425_p5 = scmp.ne.s32.totalorder %s81_s21, %s4424_s29  ;;  %p4430_p7 = scmp.lt.s32.totalorder %s4424_s29, %s4424_s29 }
  0xd1   :  { %p4431_p8 = por %p4430_p7, %p4429_p6 }
  0xd3   :  { %p4432_p9 = pnand %p4431_p8, %p4425_p5 }
  0xd5   :  { %4435 = shalt.err (!%p4432_p9)
}
  0xd6   :  { %83 = dma.hbm_to_vmem [thread:$0]  %s5453_s13, 32, %s81_s21, [#allocation5]  }
  0xd7   :  { %s4622_s1 = smov [#allocation9]   ;;  %s4623_s30 = smov [#allocation12]  }
  0xd8   :  { %s102_s9 = sshll.u32 %s4622_s1, 4  ;;  %s124_s26 = sshll.u32 %s4623_s30, 4  ;;  %s103_s9 = int_to_ptr.vmem [resolvable:$true] %s102_s9  ;;  %s125_s26 = int_to_ptr.vmem [resolvable:$true] %s124_s26 }
  0xd9   :  { %s5454_s10 = sld [smem:[#allocation46_spill]] }
  0xdf   :  { %s4436_s24 = scalar_lea.hbm %s5454_s10, 32 }
  0xe0   :  { %p4437_p10 = scmp.ne.s32.totalorder %s5454_s10, %s4436_s24  ;;  %p4440_p11 = scmp.lt.u32.totalorder %s4436_s24, %s5454_s10 }
  0xe2   :  { %p4442_p12 = pnand %p4440_p11, %p4437_p10 }
  0xe4   :  { %4445 = shalt.err (!%p4442_p12)
}
  0xe5   :  { %s4446_s21 = scalar_lea.vmem %s103_s9, 32  ;;  %p4451_p0 = scmp.lt.s32.totalorder %s103_s9, %s103_s9 }
  0xe6   :  { %p4447_p13 = scmp.ne.s32.totalorder %s103_s9, %s4446_s21  ;;  %p4452_p1 = scmp.lt.s32.totalorder %s4446_s21, %s4446_s21 }
  0xe8   :  { %p4453_p2 = por %p4452_p1, %p4451_p0 }
  0xea   :  { %p4454_p3 = pnand %p4453_p2, %p4447_p13 }
  0xec   :  { %4457 = shalt.err (!%p4454_p3)
}
  0xed   :  { %105 = dma.hbm_to_vmem [thread:$0]  %s5454_s10, 32, %s103_s9, [#allocation8]  }
  0xee   :  { %s5455_s0 = sld [smem:[#allocation48_spill]] }
  0xf4   :  { %s4458_s1 = scalar_lea.hbm %s5455_s0, 32 }
  0xf5   :  { %p4459_p4 = scmp.ne.s32.totalorder %s5455_s0, %s4458_s1  ;;  %p4462_p5 = scmp.lt.u32.totalorder %s4458_s1, %s5455_s0 }
  0xf7   :  { %p4464_p6 = pnand %p4462_p5, %p4459_p4 }
  0xf9   :  { %4467 = shalt.err (!%p4464_p6)
}
  0xfa   :  { %s4468_s22 = scalar_lea.vmem %s125_s26, 32  ;;  %p4473_p8 = scmp.lt.s32.totalorder %s125_s26, %s125_s26 }
  0xfb   :  { %p4469_p7 = scmp.ne.s32.totalorder %s125_s26, %s4468_s22  ;;  %p4474_p9 = scmp.lt.s32.totalorder %s4468_s22, %s4468_s22 }
  0xfd   :  { %p4475_p10 = por %p4474_p9, %p4473_p8 }
  0xff   :  { %p4476_p11 = pnand %p4475_p10, %p4469_p7 }
 0x101   :  { %4479 = shalt.err (!%p4476_p11)
}
 0x102   :  { %127 = dma.hbm_to_vmem [thread:$0]  %s5455_s0, 32, %s125_s26, [#allocation11]  }
 0x103   :  { %s4624_s28 = smov [#allocation15]   ;;  %s4625_s6 = smov [#allocation18]  }
 0x104   :  { %s149_s5 = sshll.u32 %s4624_s28, 4  ;;  %s177_s21 = sshll.u32 %s4625_s6, 4  ;;  %s150_s5 = int_to_ptr.vmem [resolvable:$true] %s149_s5  ;;  %s4952_s21 = int_to_ptr.vmem [resolvable:$true] %s177_s21 }
 0x105   :  { %s4480_s29 = scalar_lea.hbm %s5408_s15, 4096 }
 0x106   :  { %p4481_p12 = scmp.ne.s32.totalorder %s5408_s15, %s4480_s29  ;;  %p4484_p13 = scmp.lt.u32.totalorder %s4480_s29, %s5408_s15 }
 0x108   :  { %p4486_p0 = pnand %p4484_p13, %p4481_p12 }
 0x10a   :  { %4489 = shalt.err (!%p4486_p0)
}
 0x10b   :  { %s4490_s26 = scalar_lea.vmem %s150_s5, 4096  ;;  %p4495_p2 = scmp.lt.s32.totalorder %s150_s5, %s150_s5 }
 0x10c   :  { %p4491_p1 = scmp.ne.s32.totalorder %s150_s5, %s4490_s26  ;;  %p4496_p3 = scmp.lt.s32.totalorder %s4490_s26, %s4490_s26 }
 0x10e   :  { %p4497_p4 = por %p4496_p3, %p4495_p2 }
 0x110   :  { %p4498_p5 = pnand %p4497_p4, %p4491_p1 }
 0x112   :  { %4501 = shalt.err (!%p4498_p5)
}
 0x113   :  { %155 = dma.hbm_to_vmem [thread:$0]  %s5408_s15, 4096, %s150_s5, [#allocation14], %s4611_s3, %s4611_s3, %s4612_s7  }
 0x114   :  { %s4502_s9 = scalar_lea.hbm %s5412_s19, 4096 }
 0x115   :  { %p4503_p6 = scmp.ne.s32.totalorder %s5412_s19, %s4502_s9  ;;  %p4506_p7 = scmp.lt.u32.totalorder %s4502_s9, %s5412_s19 }
 0x117   :  { %p4508_p8 = pnand %p4506_p7, %p4503_p6 }
 0x119   :  { %4511 = shalt.err (!%p4508_p8)
}
 0x11a   :  { %s4512_s11 = scalar_lea.vmem %s4952_s21, 4096  ;;  %p4517_p10 = scmp.lt.s32.totalorder %s4952_s21, %s4952_s21 }
 0x11b   :  { %p4513_p9 = scmp.ne.s32.totalorder %s4952_s21, %s4512_s11  ;;  %p4518_p11 = scmp.lt.s32.totalorder %s4512_s11, %s4512_s11 }
 0x11d   :  { %p4519_p12 = por %p4518_p11, %p4517_p10 }
 0x11f   :  { %p4520_p13 = pnand %p4519_p12, %p4513_p9 }
 0x121   :  { %4523 = shalt.err (!%p4520_p13)
}
 0x122   :  { %183 = dma.hbm_to_vmem [thread:$0]  %s5412_s19, 4096, %s4952_s21, [#allocation17], %s4611_s3, %s4611_s3, %s4612_s7  }
 0x123   :  { %s4626_s29 = smov [#allocation21]   ;;  %s4627_s1 = smov [#allocation24]  }
 0x124   :  { %s205_s12 = sshll.u32 %s4626_s29, 4  ;;  %s230_s30 = sshll.u32 %s4627_s1, 4  ;;  %s206_s12 = int_to_ptr.vmem [resolvable:$true] %s205_s12  ;;  %s231_s30 = int_to_ptr.vmem [resolvable:$true] %s230_s30 }
 0x125   :  { %s4524_s0 = scalar_lea.hbm %s5416_s23, 2048 }
 0x126   :  { %p4525_p0 = scmp.ne.s32.totalorder %s5416_s23, %s4524_s0  ;;  %p4528_p1 = scmp.lt.u32.totalorder %s4524_s0, %s5416_s23 }
 0x128   :  { %p4530_p2 = pnand %p4528_p1, %p4525_p0 }
 0x12a   :  { %4533 = shalt.err (!%p4530_p2)
}
 0x12b   :  { %s4534_s19 = scalar_lea.vmem %s206_s12, 2048  ;;  %p4539_p4 = scmp.lt.s32.totalorder %s206_s12, %s206_s12 }
 0x12c   :  { %p4535_p3 = scmp.ne.s32.totalorder %s206_s12, %s4534_s19  ;;  %p4540_p5 = scmp.lt.s32.totalorder %s4534_s19, %s4534_s19 }
 0x12e   :  { %p4541_p6 = por %p4540_p5, %p4539_p4 }
 0x130   :  { %p4542_p7 = pnand %p4541_p6, %p4535_p3 }
 0x132   :  { %4545 = shalt.err (!%p4542_p7)
}
 0x133   :  { %211 = dma.hbm_to_vmem [thread:$0]  %s5416_s23, 2048, %s206_s12, [#allocation20], %s4616_s17, %s4616_s17, %s4617_s8  }
 0x134   :  { %s4546_s28 = scalar_lea.hbm %s5418_s25, 16 }
 0x135   :  { %p4547_p8 = scmp.ne.s32.totalorder %s5418_s25, %s4546_s28  ;;  %p4550_p9 = scmp.lt.u32.totalorder %s4546_s28, %s5418_s25 }
 0x137   :  { %p4552_p10 = pnand %p4550_p9, %p4547_p8 }
 0x139   :  { %4555 = shalt.err (!%p4552_p10)
}
 0x13a   :  { %s4556_s5 = scalar_lea.vmem %s231_s30, 16  ;;  %s4560_s29 = scalar_lea.vmem %s231_s30, 32 }
 0x13b   :  { %p4557_p11 = scmp.ne.s32.totalorder %s231_s30, %s4556_s5  ;;  %p4561_p12 = scmp.lt.s32.totalorder %s231_s30, %s231_s30 }
 0x13c   :  { %p4562_p13 = scmp.lt.s32.totalorder %s4560_s29, %s4556_s5 }
 0x13e   :  { %p4563_p0 = por %p4562_p13, %p4561_p12 }
 0x140   :  { %p4564_p1 = pnand %p4563_p0, %p4557_p11 }
 0x142   :  { %4567 = shalt.err (!%p4564_p1)
}
 0x143   :  { %233 = dma.hbm_to_vmem [thread:$0]  %s5418_s25, 16, %s231_s30, [#allocation23]  }
 0x144   :  { %s4628_s8 = smov [#allocation27]   ;;  %s4568_s26 = scalar_lea.hbm %s5420_s27, 16 }
 0x145   :  { %s252_s12 = sshll.u32 %s4628_s8, 4  ;;  %p4569_p2 = scmp.ne.s32.totalorder %s5420_s27, %s4568_s26  ;;  %s253_s12 = int_to_ptr.vmem [resolvable:$true] %s252_s12 }
 0x146   :  { %p4572_p3 = scmp.lt.u32.totalorder %s4568_s26, %s5420_s27 }
 0x148   :  { %p4574_p4 = pnand %p4572_p3, %p4569_p2 }
 0x14a   :  { %4577 = shalt.err (!%p4574_p4)
}
 0x14b   :  { %s4578_s9 = scalar_lea.vmem %s253_s12, 16  ;;  %s4582_s25 = scalar_lea.vmem %s253_s12, 32 }
 0x14c   :  { %p4579_p5 = scmp.ne.s32.totalorder %s253_s12, %s4578_s9  ;;  %p4583_p6 = scmp.lt.s32.totalorder %s253_s12, %s253_s12 }
 0x14d   :  { %p4584_p7 = scmp.lt.s32.totalorder %s4582_s25, %s4578_s9 }
 0x14f   :  { %p4585_p8 = por %p4584_p7, %p4583_p6 }
 0x151   :  { %p4586_p9 = pnand %p4585_p8, %p4579_p5 }
 0x153   :  { %4589 = shalt.err (!%p4586_p9)
}
 0x154   :  { %255 = dma.hbm_to_vmem [thread:$0]  %s5420_s27, 16, %s253_s12, [#allocation26]  }
 0x155   :  { %4590 = dma.done.wait [#allocation3], 2048  }
 0x156   :  { %4591 = vsyncadd [#allocation3], 4294965248 }
 0x157   :  { %4592 = dma.done.wait [#allocation5], 64  }
 0x158   :  { %4593 = vsyncadd [#allocation5], 4294967232 }
 0x159   :  { %4594 = dma.done.wait [#allocation8], 4128  }
 0x15a   :  { %4595 = vsyncadd [#allocation8], 4294963168 }
 0x15b   :  { %4596 = dma.done.wait [#allocation11], 4128  }
 0x15c   :  { %4597 = vsyncadd [#allocation11], 4294963168 }
 0x15d   :  { %4598 = dma.done.wait [#allocation14], 6144  }
 0x15e   :  { %4599 = vsyncadd [#allocation14], 4294961152 }
 0x15f   :  { %4600 = dma.done.wait [#allocation17], 8192  }
 0x160   :  { %4601 = vsyncadd [#allocation17], 4294959104 }
 0x161   :  { %4602 = dma.done.wait [#allocation20], 4096  }
 0x162   :  { %4603 = vsyncadd [#allocation20], 4294963200 }
 0x163   :  { %4604 = dma.done.wait [#allocation23], 1040  }
 0x164   :  { %4605 = vsyncadd [#allocation23], 4294966256 }
 0x165   :  { %4606 = dma.done.wait [#allocation26], 1040  }
 0x166   :  { %4607 = vsyncadd [#allocation26], 4294966256  ;;  %v4629_v0 = vmov 0   ;;  %v3725_v1 = vld [vmem:[#allocation2 + $0x4] ss:$8 sps:$4 sm:$0xff]   ;;  %s5456_s7 = sld [smem:[#allocation41_spill]] }
 0x167   :  { %458 = vmatprep.mubr.bf16.mxu0 %v4629_v0  ;;  %v3727_v2 = vld [vmem:[#allocation2] ss:$8 sps:$4 sm:$0xff]   ;;  %426 = vmatprep.subr.bf16.mxu0 %v3725_v1  ;;  %v3728_v3 = vld [vmem:[#allocation2 + $0x14] ss:$8 sps:$4 sm:$0xff]   ;;  %v3730_v4 = vld [vmem:[#allocation2 + $0x10] ss:$8 sps:$4 sm:$0xff]  }
 0x168   :  { %427 = vmatpush1.bf16.msra.mxu0 %v3727_v2  ;;  %v3731_v5 = vld [vmem:[#allocation2 + $0x24] ss:$8 sps:$4 sm:$0xff]   ;;  %v3733_v6 = vld [vmem:[#allocation2 + $0x20] ss:$8 sps:$4 sm:$0xff]   ;;  %v3734_v7 = vld [vmem:[#allocation2 + $0x34] ss:$8 sps:$4 sm:$0xff]  }
 0x169   :  { %428 = vmatprep.subr.bf16.mxu0 %v3728_v3  ;;  %v3736_v8 = vld [vmem:[#allocation2 + $0x30] ss:$8 sps:$4 sm:$0xff]   ;;  %v3737_v9 = vld [vmem:[#allocation2 + $0x44] ss:$8 sps:$4 sm:$0xff]   ;;  %v3739_v13 = vld [vmem:[#allocation2 + $0x40] ss:$8 sps:$4 sm:$0xff]  }
 0x16a   :  { %v3740_v15 = vld [vmem:[#allocation2 + $0x54] ss:$8 sps:$4 sm:$0xff]   ;;  %v3742_v17 = vld [vmem:[#allocation2 + $0x50] ss:$8 sps:$4 sm:$0xff]   ;;  %v3743_v19 = vld [vmem:[#allocation2 + $0x64] ss:$8 sps:$4 sm:$0xff]  }
 0x16b   :  { %v3745_v21 = vld [vmem:[#allocation2 + $0x60] ss:$8 sps:$4 sm:$0xff]   ;;  %v3746_v23 = vld [vmem:[#allocation2 + $0x74] ss:$8 sps:$4 sm:$0xff]   ;;  %v3748_v25 = vld [vmem:[#allocation2 + $0x70] ss:$8 sps:$4 sm:$0xff]  }
 0x16c   :  { %429 = vmatpush1.bf16.msra.mxu0 %v3730_v4  ;;  %v3750_v10 = vld [vmem:[%s5456_s7 + $0x4] ss:$8 sps:$4 sm:$0xff]   ;;  %v3752_v11 = vld [vmem:[%s5456_s7] ss:$8 sps:$4 sm:$0xff]   ;;  %v3753_v12 = vld [vmem:[%s5456_s7 + $0x14] ss:$8 sps:$4 sm:$0xff]  }
 0x16d   :  { %430 = vmatprep.subr.bf16.mxu0 %v3731_v5  ;;  %679 = vmatprep.subr.bf16.mxu1 %v3750_v10  ;;  %v3755_v14 = vld [vmem:[%s5456_s7 + $0x10] ss:$8 sps:$4 sm:$0xff]   ;;  %v3756_v16 = vld [vmem:[%s5456_s7 + $0x24] ss:$8 sps:$4 sm:$0xff]   ;;  %v3758_v18 = vld [vmem:[%s5456_s7 + $0x20] ss:$8 sps:$4 sm:$0xff]  }
 0x16e   :  { %680 = vmatpush1.bf16.msra.mxu1 %v3752_v11  ;;  %v3759_v20 = vld [vmem:[%s5456_s7 + $0x34] ss:$8 sps:$4 sm:$0xff]   ;;  %v3761_v22 = vld [vmem:[%s5456_s7 + $0x30] ss:$8 sps:$4 sm:$0xff]   ;;  %v3762_v24 = vld [vmem:[%s5456_s7 + $0x44] ss:$8 sps:$4 sm:$0xff]  }
 0x16f   :  { %681 = vmatprep.subr.bf16.mxu1 %v3753_v12  ;;  %v3764_v26 = vld [vmem:[%s5456_s7 + $0x40] ss:$8 sps:$4 sm:$0xff]   ;;  %s5457_s9 = sld [smem:[#allocation37_spill]]  ;;  %v3765_v28 = vld [vmem:[%s5456_s7 + $0x54] ss:$8 sps:$4 sm:$0xff]   ;;  %s5458_s0 = sld [smem:[#allocation43_spill]] }
 0x170   :  { %431 = vmatpush1.bf16.msra.mxu0 %v3733_v6  ;;  %v3767_v29 = vld [vmem:[%s5456_s7 + $0x50] ss:$8 sps:$4 sm:$0xff]   ;;  %v3768_v30 = vld [vmem:[%s5456_s7 + $0x64] ss:$8 sps:$4 sm:$0xff]   ;;  %v3770_v31 = vld [vmem:[%s5456_s7 + $0x60] ss:$8 sps:$4 sm:$0xff]  }
 0x171   :  { %432 = vmatprep.subr.bf16.mxu0 %v3734_v7  ;;  %v3771_v32 = vld [vmem:[%s5456_s7 + $0x74] ss:$8 sps:$4 sm:$0xff]   ;;  %v3773_v33 = vld [vmem:[%s5456_s7 + $0x70] ss:$8 sps:$4 sm:$0xff]   ;;  %v3774_v34 = vld [vmem:[%s5456_s7 + $0x84] ss:$8 sps:$4 sm:$0xff]  }
 0x172   :  { %682 = vmatpush1.bf16.msra.mxu1 %v3755_v14  ;;  %v3776_v35 = vld [vmem:[%s5456_s7 + $0x80] ss:$8 sps:$4 sm:$0xff]   ;;  %v3777_v36 = vld [vmem:[%s5456_s7 + $0x94] ss:$8 sps:$4 sm:$0xff]   ;;  %v3779_v37 = vld [vmem:[%s5456_s7 + $0x90] ss:$8 sps:$4 sm:$0xff]  }
 0x173   :  { %683 = vmatprep.subr.bf16.mxu1 %v3756_v16  ;;  %v3780_v38 = vld [vmem:[%s5456_s7 + $0xa4] ss:$8 sps:$4 sm:$0xff]   ;;  %v3782_v39 = vld [vmem:[%s5456_s7 + $0xa0] ss:$8 sps:$4 sm:$0xff]   ;;  %v3783_v40 = vld [vmem:[%s5456_s7 + $0xb4] ss:$8 sps:$4 sm:$0xff]  }
 0x174   :  { %433 = vmatpush1.bf16.msra.mxu0 %v3736_v8  ;;  %v3785_v41 = vld [vmem:[%s5456_s7 + $0xb0] ss:$8 sps:$4 sm:$0xff]   ;;  %v3786_v42 = vld [vmem:[%s5456_s7 + $0xc4] ss:$8 sps:$4 sm:$0xff]   ;;  %v3788_v43 = vld [vmem:[%s5456_s7 + $0xc0] ss:$8 sps:$4 sm:$0xff]  }
 0x175   :  { %434 = vmatprep.subr.bf16.mxu0 %v3737_v9  ;;  %v3749_v27 = vld [vmem:[%s5457_s9] sm:$0xff]   ;;  %v3789_v44 = vld [vmem:[%s5456_s7 + $0xd4] ss:$8 sps:$4 sm:$0xff]   ;;  %v3791_v45 = vld [vmem:[%s5456_s7 + $0xd0] ss:$8 sps:$4 sm:$0xff]   ;;  %s5460_s5 = sld [smem:[#allocation49_spill]] }
 0x176   :  { %684 = vmatpush1.bf16.msra.mxu1 %v3758_v18  ;;  %v3792_v46 = vld [vmem:[%s5456_s7 + $0xe4] ss:$8 sps:$4 sm:$0xff]   ;;  %v3794_v47 = vld [vmem:[%s5456_s7 + $0xe0] ss:$8 sps:$4 sm:$0xff]   ;;  %v3795_v48 = vld [vmem:[%s5456_s7 + $0xf4] ss:$8 sps:$4 sm:$0xff]  }
 0x177   :  { %685 = vmatprep.subr.bf16.mxu1 %v3759_v20  ;;  %v3797_v49 = vld [vmem:[%s5456_s7 + $0xf0] ss:$8 sps:$4 sm:$0xff]   ;;  %v3798_v50 = vld [vmem:[%s5458_s0] ss:$8 sps:$4 sm:$0xff]   ;;  %v3800_v51 = vld [vmem:[%s5458_s0 + $0x4] ss:$8 sps:$4 sm:$0xff]  }
 0x178   :  { %435 = vmatpush1.bf16.msra.mxu0 %v3739_v13  ;;  %v3803_v52 = vld [vmem:[%s5458_s0 + $0x14] ss:$8 sps:$4 sm:$0xff]   ;;  %v3801_v53 = vld [vmem:[%s5458_s0 + $0x10] ss:$8 sps:$4 sm:$0xff]   ;;  %v3806_v54 = vld [vmem:[%s5458_s0 + $0x24] ss:$8 sps:$4 sm:$0xff]  }
 0x179   :  { %436 = vmatprep.subr.bf16.mxu0 %v3740_v15  ;;  %v3804_v55 = vld [vmem:[%s5458_s0 + $0x20] ss:$8 sps:$4 sm:$0xff]   ;;  %v3809_v56 = vld [vmem:[%s5458_s0 + $0x34] ss:$8 sps:$4 sm:$0xff]   ;;  %v3807_v57 = vld [vmem:[%s5458_s0 + $0x30] ss:$8 sps:$4 sm:$0xff]   ;;  %v330_v15 = vlaneseq }
 0x17a   :  { %686 = vmatpush1.bf16.msra.mxu1 %v3761_v22  ;;  %v3812_v58 = vld [vmem:[%s5458_s0 + $0x44] ss:$8 sps:$4 sm:$0xff]   ;;  %v3810_v59 = vld [vmem:[%s5458_s0 + $0x40] ss:$8 sps:$4 sm:$0xff]   ;;  %v3815_v60 = vld [vmem:[%s5458_s0 + $0x54] ss:$8 sps:$4 sm:$0xff]  }
 0x17b   :  { %687 = vmatprep.subr.bf16.mxu1 %v3762_v24  ;;  %v3813_v61 = vld [vmem:[%s5458_s0 + $0x50] ss:$8 sps:$4 sm:$0xff]   ;;  %v3818_v62 = vld [vmem:[%s5458_s0 + $0x64] ss:$8 sps:$4 sm:$0xff]   ;;  %v3816_v63 = vld [vmem:[%s5458_s0 + $0x60] ss:$8 sps:$4 sm:$0xff]  }
 0x17c   :  { %437 = vmatpush1.bf16.msra.mxu0 %v3742_v17  ;;  %v3821_v1 = vld [vmem:[%s5458_s0 + $0x74] ss:$8 sps:$4 sm:$0xff]   ;;  %v3819_v2 = vld [vmem:[%s5458_s0 + $0x70] ss:$8 sps:$4 sm:$0xff]   ;;  %v3824_v3 = vld [vmem:[%s5458_s0 + $0x84] ss:$8 sps:$4 sm:$0xff]  }
 0x17d   :  { %438 = vmatprep.subr.bf16.mxu0 %v3743_v19  ;;  %v3822_v4 = vld [vmem:[%s5458_s0 + $0x80] ss:$8 sps:$4 sm:$0xff]   ;;  %v3827_v5 = vld [vmem:[%s5458_s0 + $0x94] ss:$8 sps:$4 sm:$0xff]   ;;  %v3825_v6 = vld [vmem:[%s5458_s0 + $0x90] ss:$8 sps:$4 sm:$0xff]  }
 0x17e   :  { %688 = vmatpush1.bf16.msra.mxu1 %v3764_v26  ;;  %v3830_v7 = vld [vmem:[%s5458_s0 + $0xa4] ss:$8 sps:$4 sm:$0xff]   ;;  %v3828_v8 = vld [vmem:[%s5458_s0 + $0xa0] ss:$8 sps:$4 sm:$0xff]   ;;  %v3833_v9 = vld [vmem:[%s5458_s0 + $0xb4] ss:$8 sps:$4 sm:$0xff]  }
 0x17f   :  { %689 = vmatprep.subr.bf16.mxu1 %v3765_v28  ;;  %v3831_v10 = vld [vmem:[%s5458_s0 + $0xb0] ss:$8 sps:$4 sm:$0xff]   ;;  %v3836_v11 = vld [vmem:[%s5458_s0 + $0xc4] ss:$8 sps:$4 sm:$0xff]   ;;  %v3834_v12 = vld [vmem:[%s5458_s0 + $0xc0] ss:$8 sps:$4 sm:$0xff]  }
 0x180   :  { %439 = vmatpush1.bf16.msra.mxu0 %v3745_v21  ;;  %v3839_v13 = vld [vmem:[%s5458_s0 + $0xd4] ss:$8 sps:$4 sm:$0xff]   ;;  %v3837_v14 = vld [vmem:[%s5458_s0 + $0xd0] ss:$8 sps:$4 sm:$0xff]   ;;  %v331_v16 = vshrl.u32 %v330_v15, 7  ;;  %s5459_s7 = sld [smem:[#allocation40_spill]] }
 0x181   :  { %440 = vmatprep.subr.bf16.mxu0 %v3746_v23  ;;  %s5461_s27 = sld [smem:[#allocation38_spill]]  ;;  %vm4631_vm0 = vmmov 0   ;;  %s5462_s28 = sld [smem:[#allocation50_spill]] }
 0x182   :  { %690 = vmatpush1.bf16.msra.mxu1 %v3767_v29  ;;  %v5213_v17 = vsub.s32 0, %v331_v16  ;;  %v5218_v19 = vsub.s32 1, %v331_v16  ;;  %s5463_s11 = sld [smem:[#allocation51_spill]] }
 0x183   :  { %691 = vmatprep.subr.bf16.mxu1 %v3768_v30 }
 0x184   :  { %441 = vmatpush1.bf16.msra.mxu0 %v3748_v25 }
 0x185   :  { %932 = vmatprep.subr.bf16.mxu0 %v3800_v51  ;;  %v3861_v51 = vld [vmem:[#allocation7 + $0x50] ss:$8 sps:$4 sm:$0xff]  }
 0x186   :  { %692 = vmatpush1.bf16.msra.mxu1 %v3770_v31  ;;  %v328_v18 = vld [vmem:[%s5459_s7] sm:$0x3] }
 0x187   :  { %459 = vmatmul.mubr.bf16.vlgmr.msra.gmra.mrb[0].mxu0 %v3749_v27  ;;  %693 = vmatprep.subr.bf16.mxu1 %v3771_v32  ;;  %v333_v20 = vrot.slane %v328_v18, %v5213_v17  ;;  %v337_v21 = vrot.slane %v328_v18, %v5218_v19 }
 0x188   :  { %933 = vmatpush1.bf16.msra.mxu0 %v3798_v50  ;;  %v3863_v50 = vld [vmem:[#allocation7 + $0x54] ss:$8 sps:$4 sm:$0xff]  }
 0x189   :  { %934 = vmatprep.subr.bf16.mxu0 %v3803_v52  ;;  %v3866_v52 = vld [vmem:[#allocation7 + $0x64] ss:$8 sps:$4 sm:$0xff]  }
 0x18a   :  { %694 = vmatpush1.bf16.msra.mxu1 %v3773_v33 }
 0x18b   :  { %695 = vmatprep.subr.bf16.mxu1 %v3774_v34 }
 0x18c   :  { %935 = vmatpush1.bf16.msra.mxu0 %v3801_v53  ;;  %v3864_v53 = vld [vmem:[#allocation7 + $0x60] ss:$8 sps:$4 sm:$0xff]  }
 0x18d   :  { %936 = vmatprep.subr.bf16.mxu0 %v3806_v54  ;;  %v3869_v54 = vld [vmem:[#allocation7 + $0x74] ss:$8 sps:$4 sm:$0xff]  }
 0x18e   :  { %696 = vmatpush1.bf16.msra.mxu1 %v3776_v35 }
 0x18f   :  { %697 = vmatprep.subr.bf16.mxu1 %v3777_v36  ;;  %v3842_v36 = vld [vmem:[%s5458_s0 + $0xe4] ss:$8 sps:$4 sm:$0xff]  }
 0x190   :  { %937 = vmatpush1.bf16.msra.mxu0 %v3804_v55  ;;  %v3867_v55 = vld [vmem:[#allocation7 + $0x70] ss:$8 sps:$4 sm:$0xff]  }
 0x191   :  { %938 = vmatprep.subr.bf16.mxu0 %v3809_v56  ;;  %v3872_v56 = vld [vmem:[#allocation7 + $0x84] ss:$8 sps:$4 sm:$0xff]  }
 0x192   :  { %698 = vmatpush1.bf16.msra.mxu1 %v3779_v37  ;;  %v3840_v37 = vld [vmem:[%s5458_s0 + $0xe0] ss:$8 sps:$4 sm:$0xff]  }
 0x193   :  { %699 = vmatprep.subr.bf16.mxu1 %v3780_v38  ;;  %v3845_v38 = vld [vmem:[%s5458_s0 + $0xf4] ss:$8 sps:$4 sm:$0xff]  }
 0x194   :  { %939 = vmatpush1.bf16.msra.mxu0 %v3807_v57  ;;  %v3870_v57 = vld [vmem:[#allocation7 + $0x80] ss:$8 sps:$4 sm:$0xff]  }
 0x195   :  { %940 = vmatprep.subr.bf16.mxu0 %v3812_v58  ;;  %v3875_v58 = vld [vmem:[#allocation7 + $0x94] ss:$8 sps:$4 sm:$0xff]  }
 0x196   :  { %700 = vmatpush1.bf16.msra.mxu1 %v3782_v39  ;;  %v3843_v39 = vld [vmem:[%s5458_s0 + $0xf0] ss:$8 sps:$4 sm:$0xff]  }
 0x197   :  { %701 = vmatprep.subr.bf16.mxu1 %v3783_v40  ;;  %v3846_v40 = vld [vmem:[#allocation7] ss:$8 sps:$4 sm:$0xff]  }
 0x198   :  { %941 = vmatpush1.bf16.msra.mxu0 %v3810_v59  ;;  %v3873_v59 = vld [vmem:[#allocation7 + $0x90] ss:$8 sps:$4 sm:$0xff]  }
 0x199   :  { %942 = vmatprep.subr.bf16.mxu0 %v3815_v60  ;;  %v3878_v60 = vld [vmem:[#allocation7 + $0xa4] ss:$8 sps:$4 sm:$0xff]  }
 0x19a   :  { %702 = vmatpush1.bf16.msra.mxu1 %v3785_v41  ;;  %v3848_v41 = vld [vmem:[#allocation7 + $0x4] ss:$8 sps:$4 sm:$0xff]  }
 0x19b   :  { %703 = vmatprep.subr.bf16.mxu1 %v3786_v42  ;;  %v3851_v42 = vld [vmem:[#allocation7 + $0x14] ss:$8 sps:$4 sm:$0xff]  }
 0x19c   :  { %943 = vmatpush1.bf16.msra.mxu0 %v3813_v61  ;;  %v3876_v61 = vld [vmem:[#allocation7 + $0xa0] ss:$8 sps:$4 sm:$0xff]  }
 0x19d   :  { %944 = vmatprep.subr.bf16.mxu0 %v3818_v62  ;;  %v3881_v62 = vld [vmem:[#allocation7 + $0xb4] ss:$8 sps:$4 sm:$0xff]  }
 0x19e   :  { %704 = vmatpush1.bf16.msra.mxu1 %v3788_v43  ;;  %v3849_v43 = vld [vmem:[#allocation7 + $0x10] ss:$8 sps:$4 sm:$0xff]  }
 0x19f   :  { %705 = vmatprep.subr.bf16.mxu1 %v3789_v44  ;;  %v3854_v44 = vld [vmem:[#allocation7 + $0x24] ss:$8 sps:$4 sm:$0xff]  }
 0x1a0   :  { %945 = vmatpush1.bf16.msra.mxu0 %v3816_v63  ;;  %v3879_v63 = vld [vmem:[#allocation7 + $0xb0] ss:$8 sps:$4 sm:$0xff]  }
 0x1a1   :  { %946 = vmatprep.subr.bf16.mxu0 %v3821_v1  ;;  %v3884_v1 = vld [vmem:[#allocation7 + $0xc4] ss:$8 sps:$4 sm:$0xff]  }
 0x1a2   :  { %706 = vmatpush1.bf16.msra.mxu1 %v3791_v45  ;;  %v3852_v45 = vld [vmem:[#allocation7 + $0x20] ss:$8 sps:$4 sm:$0xff]  }
 0x1a3   :  { %707 = vmatprep.subr.bf16.mxu1 %v3792_v46  ;;  %v3857_v46 = vld [vmem:[#allocation7 + $0x34] ss:$8 sps:$4 sm:$0xff]  }
 0x1a4   :  { %947 = vmatpush1.bf16.msra.mxu0 %v3819_v2  ;;  %v3882_v2 = vld [vmem:[#allocation7 + $0xc0] ss:$8 sps:$4 sm:$0xff]  }
 0x1a5   :  { %948 = vmatprep.subr.bf16.mxu0 %v3824_v3  ;;  %v3887_v3 = vld [vmem:[#allocation7 + $0xd4] ss:$8 sps:$4 sm:$0xff]  }
 0x1a6   :  { %708 = vmatpush1.bf16.msra.mxu1 %v3794_v47  ;;  %v3855_v47 = vld [vmem:[#allocation7 + $0x30] ss:$8 sps:$4 sm:$0xff]  }
 0x1a7   :  { %709 = vmatprep.subr.bf16.mxu1 %v3795_v48  ;;  %v3860_v48 = vld [vmem:[#allocation7 + $0x44] ss:$8 sps:$4 sm:$0xff]  }
 0x1a8   :  { %949 = vmatpush1.bf16.msra.mxu0 %v3822_v4  ;;  %v3885_v4 = vld [vmem:[#allocation7 + $0xd0] ss:$8 sps:$4 sm:$0xff]  }
 0x1a9   :  { %950 = vmatprep.subr.bf16.mxu0 %v3827_v5  ;;  %v507_v5 = vld [vmem:[#allocation4] sm:$0x3] }
 0x1aa   :  { %710 = vmatpush1.bf16.msra.mxu1 %v3797_v49  ;;  %v3858_v49 = vld [vmem:[#allocation7 + $0x40] ss:$8 sps:$4 sm:$0xff]  }
 0x1ab   :  { %1185 = vmatprep.subr.bf16.mxu1 %v3848_v41  ;;  %v3914_v41 = vld [vmem:[#allocation10 + $0x64] ss:$8 sps:$4 sm:$0xff]  }
 0x1ac   :  { %951 = vmatpush1.bf16.msra.mxu0 %v3825_v6  ;;  %v512_v6 = vrot.slane %v507_v5, %v5213_v17 }
 0x1ad   :  { %952 = vmatprep.subr.bf16.mxu0 %v3830_v7  ;;  %v516_v7 = vrot.slane %v507_v5, %v5218_v19 }
 0x1b0   :  { %953 = vmatpush1.bf16.msra.mxu0 %v3828_v8 }
 0x1b1   :  { %954 = vmatprep.subr.bf16.mxu0 %v3833_v9 }
 0x1b4   :  { %955 = vmatpush1.bf16.msra.mxu0 %v3831_v10 }
 0x1b5   :  { %956 = vmatprep.subr.bf16.mxu0 %v3836_v11 }
 0x1b8   :  { %957 = vmatpush1.bf16.msra.mxu0 %v3834_v12 }
 0x1b9   :  { %958 = vmatprep.subr.bf16.mxu0 %v3839_v13 }
 0x1bc   :  { %959 = vmatpush1.bf16.msra.mxu0 %v3837_v14 }
 0x1bd   :  { %960 = vmatprep.subr.bf16.mxu0 %v3842_v36  ;;  %v3903_v36 = vld [vmem:[#allocation10 + $0x30] ss:$8 sps:$4 sm:$0xff]  }
 0x1c0   :  { %961 = vmatpush1.bf16.msra.mxu0 %v3840_v37  ;;  %v3908_v37 = vld [vmem:[#allocation10 + $0x44] ss:$8 sps:$4 sm:$0xff]  }
 0x1c1   :  { %962 = vmatprep.subr.bf16.mxu0 %v3845_v38  ;;  %v3906_v38 = vld [vmem:[#allocation10 + $0x40] ss:$8 sps:$4 sm:$0xff]  }
 0x1c4   :  { %963 = vmatpush1.bf16.msra.mxu0 %v3843_v39  ;;  %v3911_v39 = vld [vmem:[#allocation10 + $0x54] ss:$8 sps:$4 sm:$0xff]  }
 0x25a   :  { %v460_v22 = vpop.f32.mrb[0].mxu0 }
 0x25b   :  { %v461_v23 = vadd.f32 %v460_v22, %v333_v20  ;;  %v462_v24 = vpop.f32.mrb[1].mxu0 }
 0x25c   :  { %v463_v25 = vadd.f32 %v462_v24, %v337_v21  ;;  %v464_v26 = vpop.f32.mrb[2].mxu0 }
 0x25d   :  { %v465_v27 = vadd.f32 %v464_v26, %v333_v20  ;;  %v466_v28 = vpop.f32.mrb[3].mxu0  ;;  %v469_v30 = vmax.f32 %v461_v23, 0.0  ;;  %v3888_v26 = vld [vmem:[#allocation7 + $0xe0] ss:$8 sps:$4 sm:$0xff]  }
 0x25e   :  { %v467_v29 = vadd.f32 %v466_v28, %v337_v21  ;;  %v470_v32 = vmax.f32 %v463_v25, 0.0  ;;  %v3890_v25 = vld [vmem:[#allocation7 + $0xe4] ss:$8 sps:$4 sm:$0xff]   ;;  %v3891_v28 = vld [vmem:[#allocation7 + $0xf0] ss:$8 sps:$4 sm:$0xff]  }
 0x25f   :  { %v471_v31 = vmax.f32 %v465_v27, 0.0  ;;  %v3893_v27 = vld [vmem:[#allocation7 + $0xf4] ss:$8 sps:$4 sm:$0xff]  }
 0x260   :  { %v472_v33 = vmax.f32 %v467_v29, 0.0  ;;  %v3894_v29 = vld [vmem:[#allocation10] ss:$8 sps:$4 sm:$0xff]  }
 0x261   :  { %v473_v34 = vpack.c.bf16 %v471_v31, %v469_v30  ;;  %v3896_v30 = vld [vmem:[#allocation10 + $0x4] ss:$8 sps:$4 sm:$0xff]   ;;  %v3899_v31 = vld [vmem:[#allocation10 + $0x14] ss:$8 sps:$4 sm:$0xff]  }
 0x262   :  { %v474_v35 = vpack.c.bf16 %v472_v33, %v470_v32  ;;  %1438 = vmatprep.subr.bf16.mxu0 %v3896_v30  ;;  %v3897_v32 = vld [vmem:[#allocation10 + $0x10] ss:$8 sps:$4 sm:$0xff]   ;;  %v3902_v33 = vld [vmem:[#allocation10 + $0x24] ss:$8 sps:$4 sm:$0xff]  }
 0x263   :  { %v3960_v30 = vld [vmem:[#allocation13 + $0x60] ss:$8 sps:$4 sm:$0xff]  }
 0x264   :  { %711 = vmatprep.mubr.bf16.mxu1 %v474_v35  ;;  %v3905_v35 = vld [vmem:[#allocation10 + $0x34] ss:$8 sps:$4 sm:$0xff]  }
 0x265   :  { %712 = vmatmul.mubr.bf16.vlgmr.msra.gmra.mrb[0].mxu1 %v473_v34  ;;  %v3900_v34 = vld [vmem:[#allocation10 + $0x20] ss:$8 sps:$4 sm:$0xff]  }
 0x266   :  { %1186 = vmatpush1.bf16.msra.mxu1 %v3846_v40  ;;  %v3909_v40 = vld [vmem:[#allocation10 + $0x50] ss:$8 sps:$4 sm:$0xff]  }
 0x267   :  { %1187 = vmatprep.subr.bf16.mxu1 %v3851_v42  ;;  %v3912_v42 = vld [vmem:[#allocation10 + $0x60] ss:$8 sps:$4 sm:$0xff]  }
 0x26a   :  { %1188 = vmatpush1.bf16.msra.mxu1 %v3849_v43  ;;  %v3917_v43 = vld [vmem:[#allocation10 + $0x74] ss:$8 sps:$4 sm:$0xff]  }
 0x26b   :  { %1189 = vmatprep.subr.bf16.mxu1 %v3854_v44  ;;  %v3915_v44 = vld [vmem:[#allocation10 + $0x70] ss:$8 sps:$4 sm:$0xff]  }
 0x26e   :  { %1190 = vmatpush1.bf16.msra.mxu1 %v3852_v45  ;;  %v3920_v45 = vld [vmem:[#allocation10 + $0x84] ss:$8 sps:$4 sm:$0xff]  }
 0x26f   :  { %1191 = vmatprep.subr.bf16.mxu1 %v3857_v46  ;;  %v3918_v46 = vld [vmem:[#allocation10 + $0x80] ss:$8 sps:$4 sm:$0xff]  }
 0x272   :  { %1192 = vmatpush1.bf16.msra.mxu1 %v3855_v47  ;;  %v3923_v47 = vld [vmem:[#allocation10 + $0x94] ss:$8 sps:$4 sm:$0xff]  }
 0x273   :  { %1193 = vmatprep.subr.bf16.mxu1 %v3860_v48  ;;  %v3921_v48 = vld [vmem:[#allocation10 + $0x90] ss:$8 sps:$4 sm:$0xff]  }
 0x276   :  { %1194 = vmatpush1.bf16.msra.mxu1 %v3858_v49  ;;  %v3926_v49 = vld [vmem:[#allocation10 + $0xa4] ss:$8 sps:$4 sm:$0xff]  }
 0x277   :  { %1195 = vmatprep.subr.bf16.mxu1 %v3863_v50  ;;  %v3924_v50 = vld [vmem:[#allocation10 + $0xa0] ss:$8 sps:$4 sm:$0xff]  }
 0x27a   :  { %1196 = vmatpush1.bf16.msra.mxu1 %v3861_v51  ;;  %v3929_v51 = vld [vmem:[#allocation10 + $0xb4] ss:$8 sps:$4 sm:$0xff]  }
 0x27b   :  { %1197 = vmatprep.subr.bf16.mxu1 %v3866_v52  ;;  %v3927_v52 = vld [vmem:[#allocation10 + $0xb0] ss:$8 sps:$4 sm:$0xff]  }
 0x27e   :  { %1198 = vmatpush1.bf16.msra.mxu1 %v3864_v53  ;;  %v3932_v53 = vld [vmem:[#allocation10 + $0xc4] ss:$8 sps:$4 sm:$0xff]  }
 0x27f   :  { %1199 = vmatprep.subr.bf16.mxu1 %v3869_v54  ;;  %v3930_v54 = vld [vmem:[#allocation10 + $0xc0] ss:$8 sps:$4 sm:$0xff]  }
 0x282   :  { %1200 = vmatpush1.bf16.msra.mxu1 %v3867_v55  ;;  %v3935_v55 = vld [vmem:[#allocation10 + $0xd4] ss:$8 sps:$4 sm:$0xff]  }
 0x283   :  { %1201 = vmatprep.subr.bf16.mxu1 %v3872_v56  ;;  %v3933_v56 = vld [vmem:[#allocation10 + $0xd0] ss:$8 sps:$4 sm:$0xff]  }
 0x286   :  { %1202 = vmatpush1.bf16.msra.mxu1 %v3870_v57  ;;  %v760_v57 = vld [vmem:[#allocation6] sm:$0x3] }
 0x287   :  { %1203 = vmatprep.subr.bf16.mxu1 %v3875_v58  ;;  %v765_v58 = vrot.slane %v760_v57, %v5213_v17 }
 0x28a   :  { %1204 = vmatpush1.bf16.msra.mxu1 %v3873_v59  ;;  %v769_v59 = vrot.slane %v760_v57, %v5218_v19  ;;  %v3999_v57 = vld [vmem:[%s5460_s5 + $0xb0] ss:$8 sps:$4 sm:$0xff]  }
 0x28b   :  { %1205 = vmatprep.subr.bf16.mxu1 %v3878_v60 }
 0x28e   :  { %1206 = vmatpush1.bf16.msra.mxu1 %v3876_v61 }
 0x28f   :  { %1207 = vmatprep.subr.bf16.mxu1 %v3881_v62 }
 0x292   :  { %1208 = vmatpush1.bf16.msra.mxu1 %v3879_v63 }
 0x293   :  { %1209 = vmatprep.subr.bf16.mxu1 %v3884_v1 }
 0x296   :  { %1210 = vmatpush1.bf16.msra.mxu1 %v3882_v2 }
 0x297   :  { %1211 = vmatprep.subr.bf16.mxu1 %v3887_v3 }
 0x29a   :  { %1212 = vmatpush1.bf16.msra.mxu1 %v3885_v4 }
 0x29b   :  { %1213 = vmatprep.subr.bf16.mxu1 %v3890_v25  ;;  %v3956_v25 = vld [vmem:[#allocation13 + $0x44] ss:$8 sps:$4 sm:$0xff]  }
 0x29e   :  { %1214 = vmatpush1.bf16.msra.mxu1 %v3888_v26  ;;  %v3954_v26 = vld [vmem:[#allocation13 + $0x40] ss:$8 sps:$4 sm:$0xff]  }
 0x29f   :  { %1215 = vmatprep.subr.bf16.mxu1 %v3893_v27  ;;  %v3959_v27 = vld [vmem:[#allocation13 + $0x54] ss:$8 sps:$4 sm:$0xff]  }
 0x2a2   :  { %1216 = vmatpush1.bf16.msra.mxu1 %v3891_v28  ;;  %v3957_v28 = vld [vmem:[#allocation13 + $0x50] ss:$8 sps:$4 sm:$0xff]  }
 0x338   :  { %v713_v8 = vpop.f32.mrb[0].mxu1 }
 0x339   :  { %v714_v9 = vadd.f32 %v713_v8, %v512_v6  ;;  %v715_v10 = vpop.f32.mrb[1].mxu1 }
 0x33a   :  { %v716_v11 = vadd.f32 %v715_v10, %v516_v7  ;;  %v717_v12 = vpop.f32.mrb[2].mxu1 }
 0x33b   :  { %v718_v13 = vadd.f32 %v717_v12, %v512_v6  ;;  %v719_v14 = vpop.f32.mrb[3].mxu1  ;;  %v722_v18 = vmax.f32 %v714_v9, 0.0  ;;  %v3936_v12 = vld [vmem:[#allocation10 + $0xe0] ss:$8 sps:$4 sm:$0xff]  }
 0x33c   :  { %v720_v16 = vadd.f32 %v719_v14, %v516_v7  ;;  %v723_v21 = vmax.f32 %v716_v11, 0.0  ;;  %v3938_v11 = vld [vmem:[#allocation10 + $0xe4] ss:$8 sps:$4 sm:$0xff]   ;;  %v3939_v14 = vld [vmem:[#allocation10 + $0xf0] ss:$8 sps:$4 sm:$0xff]  }
 0x33d   :  { %v724_v20 = vmax.f32 %v718_v13, 0.0  ;;  %v3941_v13 = vld [vmem:[#allocation10 + $0xf4] ss:$8 sps:$4 sm:$0xff]  }
 0x33e   :  { %v725_v22 = vmax.f32 %v720_v16, 0.0  ;;  %v3942_v16 = vld [vmem:[#allocation13] ss:$8 sps:$4 sm:$0xff]  }
 0x33f   :  { %v726_v23 = vpack.c.bf16 %v724_v20, %v722_v18  ;;  %v3944_v18 = vld [vmem:[#allocation13 + $0x4] ss:$8 sps:$4 sm:$0xff]   ;;  %v3947_v20 = vld [vmem:[#allocation13 + $0x14] ss:$8 sps:$4 sm:$0xff]  }
 0x340   :  { %v727_v24 = vpack.c.bf16 %v725_v22, %v723_v21  ;;  %1615 = vmatprep.subr.bf16.mxu1 %v3944_v18  ;;  %v3945_v21 = vld [vmem:[#allocation13 + $0x10] ss:$8 sps:$4 sm:$0xff]   ;;  %v3950_v22 = vld [vmem:[#allocation13 + $0x24] ss:$8 sps:$4 sm:$0xff]  }
 0x341   :  { %v4010_v18 = vld [vmem:[%s5460_s5 + $0xe4] ss:$8 sps:$4 sm:$0xff]  }
 0x342   :  { %964 = vmatprep.mubr.bf16.mxu0 %v727_v24  ;;  %v3951_v24 = vld [vmem:[#allocation13 + $0x30] ss:$8 sps:$4 sm:$0xff]  }
 0x343   :  { %965 = vmatmul.mubr.bf16.vlgmr.msra.gmra.mrb[4].mxu0 %v726_v23  ;;  %v3948_v23 = vld [vmem:[#allocation13 + $0x20] ss:$8 sps:$4 sm:$0xff]  }
 0x344   :  { %1439 = vmatpush1.bf16.msra.mxu0 %v3894_v29  ;;  %v3962_v29 = vld [vmem:[#allocation13 + $0x64] ss:$8 sps:$4 sm:$0xff]  }
 0x345   :  { %1440 = vmatprep.subr.bf16.mxu0 %v3899_v31  ;;  %v3965_v31 = vld [vmem:[#allocation13 + $0x74] ss:$8 sps:$4 sm:$0xff]  }
 0x348   :  { %1441 = vmatpush1.bf16.msra.mxu0 %v3897_v32  ;;  %v3963_v32 = vld [vmem:[#allocation13 + $0x70] ss:$8 sps:$4 sm:$0xff]  }
 0x349   :  { %1442 = vmatprep.subr.bf16.mxu0 %v3902_v33  ;;  %v3968_v33 = vld [vmem:[%s5460_s5 + $0x4] ss:$8 sps:$4 sm:$0xff]  }
 0x34c   :  { %1443 = vmatpush1.bf16.msra.mxu0 %v3900_v34  ;;  %v3966_v34 = vld [vmem:[%s5460_s5] ss:$8 sps:$4 sm:$0xff]  }
 0x34d   :  { %1444 = vmatprep.subr.bf16.mxu0 %v3905_v35  ;;  %v3971_v35 = vld [vmem:[%s5460_s5 + $0x14] ss:$8 sps:$4 sm:$0xff]  }
 0x350   :  { %1445 = vmatpush1.bf16.msra.mxu0 %v3903_v36  ;;  %v4215_v36 = vld [vmem:[%s5457_s9] sm:$0xff]  }
 0x351   :  { %1446 = vmatprep.subr.bf16.mxu0 %v3908_v37  ;;  %v3969_v37 = vld [vmem:[%s5460_s5 + $0x10] ss:$8 sps:$4 sm:$0xff]  }
 0x354   :  { %1447 = vmatpush1.bf16.msra.mxu0 %v3906_v38  ;;  %v3974_v38 = vld [vmem:[%s5460_s5 + $0x24] ss:$8 sps:$4 sm:$0xff]  }
 0x355   :  { %1448 = vmatprep.subr.bf16.mxu0 %v3911_v39  ;;  %v3972_v39 = vld [vmem:[%s5460_s5 + $0x20] ss:$8 sps:$4 sm:$0xff]  }
 0x358   :  { %1449 = vmatpush1.bf16.msra.mxu0 %v3909_v40  ;;  %v3977_v40 = vld [vmem:[%s5460_s5 + $0x34] ss:$8 sps:$4 sm:$0xff]  }
 0x359   :  { %1450 = vmatprep.subr.bf16.mxu0 %v3914_v41  ;;  %v3975_v41 = vld [vmem:[%s5460_s5 + $0x30] ss:$8 sps:$4 sm:$0xff]  }
 0x35c   :  { %1451 = vmatpush1.bf16.msra.mxu0 %v3912_v42  ;;  %v3980_v42 = vld [vmem:[%s5460_s5 + $0x44] ss:$8 sps:$4 sm:$0xff]  }
 0x35d   :  { %1452 = vmatprep.subr.bf16.mxu0 %v3917_v43  ;;  %v3978_v43 = vld [vmem:[%s5460_s5 + $0x40] ss:$8 sps:$4 sm:$0xff]  }
 0x360   :  { %1453 = vmatpush1.bf16.msra.mxu0 %v3915_v44  ;;  %v3983_v44 = vld [vmem:[%s5460_s5 + $0x54] ss:$8 sps:$4 sm:$0xff]  }
 0x361   :  { %1454 = vmatprep.subr.bf16.mxu0 %v3920_v45  ;;  %v3981_v45 = vld [vmem:[%s5460_s5 + $0x50] ss:$8 sps:$4 sm:$0xff]  }
 0x364   :  { %1455 = vmatpush1.bf16.msra.mxu0 %v3918_v46  ;;  %v3986_v46 = vld [vmem:[%s5460_s5 + $0x64] ss:$8 sps:$4 sm:$0xff]  }
 0x365   :  { %1456 = vmatprep.subr.bf16.mxu0 %v3923_v47  ;;  %v3984_v47 = vld [vmem:[%s5460_s5 + $0x60] ss:$8 sps:$4 sm:$0xff]  }
 0x368   :  { %1457 = vmatpush1.bf16.msra.mxu0 %v3921_v48  ;;  %v3989_v48 = vld [vmem:[%s5460_s5 + $0x74] ss:$8 sps:$4 sm:$0xff]  }
 0x369   :  { %1458 = vmatprep.subr.bf16.mxu0 %v3926_v49  ;;  %v3987_v49 = vld [vmem:[%s5460_s5 + $0x70] ss:$8 sps:$4 sm:$0xff]  }
 0x36c   :  { %1459 = vmatpush1.bf16.msra.mxu0 %v3924_v50  ;;  %v3992_v50 = vld [vmem:[%s5460_s5 + $0x84] ss:$8 sps:$4 sm:$0xff]  }
 0x36d   :  { %1460 = vmatprep.subr.bf16.mxu0 %v3929_v51  ;;  %v3990_v51 = vld [vmem:[%s5460_s5 + $0x80] ss:$8 sps:$4 sm:$0xff]  }
 0x370   :  { %1461 = vmatpush1.bf16.msra.mxu0 %v3927_v52  ;;  %v3995_v52 = vld [vmem:[%s5460_s5 + $0x94] ss:$8 sps:$4 sm:$0xff]  }
 0x371   :  { %1462 = vmatprep.subr.bf16.mxu0 %v3932_v53  ;;  %v3993_v53 = vld [vmem:[%s5460_s5 + $0x90] ss:$8 sps:$4 sm:$0xff]  }
 0x374   :  { %1463 = vmatpush1.bf16.msra.mxu0 %v3930_v54  ;;  %v3998_v54 = vld [vmem:[%s5460_s5 + $0xa4] ss:$8 sps:$4 sm:$0xff]  }
 0x375   :  { %1464 = vmatprep.subr.bf16.mxu0 %v3935_v55  ;;  %v3996_v55 = vld [vmem:[%s5460_s5 + $0xa0] ss:$8 sps:$4 sm:$0xff]  }
 0x378   :  { %1465 = vmatpush1.bf16.msra.mxu0 %v3933_v56  ;;  %v4001_v56 = vld [vmem:[%s5460_s5 + $0xb4] ss:$8 sps:$4 sm:$0xff]  }
 0x379   :  { %1466 = vmatprep.subr.bf16.mxu0 %v3938_v11 }
 0x37c   :  { %1467 = vmatpush1.bf16.msra.mxu0 %v3936_v12 }
 0x37d   :  { %1468 = vmatprep.subr.bf16.mxu0 %v3941_v13 }
 0x380   :  { %1469 = vmatpush1.bf16.msra.mxu0 %v3939_v14 }
 0x416   :  { %v966_v60 = vpop.f32.mrb[4].mxu0 }
 0x417   :  { %v967_v61 = vadd.f32 %v966_v60, %v765_v58  ;;  %v968_v62 = vpop.f32.mrb[5].mxu0  ;;  %v4007_v60 = vld [vmem:[%s5460_s5 + $0xd4] ss:$8 sps:$4 sm:$0xff]  }
 0x418   :  { %v969_v63 = vadd.f32 %v968_v62, %v769_v59  ;;  %v970_v1 = vpop.f32.mrb[6].mxu0  ;;  %v1013_v62 = vld [vmem:[#allocation9] sm:$0x3] }
 0x419   :  { %v971_v2 = vadd.f32 %v970_v1, %v765_v58  ;;  %v972_v3 = vpop.f32.mrb[7].mxu0  ;;  %v975_v5 = vmax.f32 %v967_v61, 0.0  ;;  %v4004_v58 = vld [vmem:[%s5460_s5 + $0xc4] ss:$8 sps:$4 sm:$0xff]   ;;  %v4005_v61 = vld [vmem:[%s5460_s5 + $0xd0] ss:$8 sps:$4 sm:$0xff]   ;;  %v1022_v1 = vrot.slane %v1013_v62, %v5218_v19 }
 0x41a   :  { %v973_v4 = vadd.f32 %v972_v3, %v769_v59  ;;  %v976_v7 = vmax.f32 %v969_v63, 0.0  ;;  %v4002_v59 = vld [vmem:[%s5460_s5 + $0xc0] ss:$8 sps:$4 sm:$0xff]   ;;  %v1018_v63 = vrot.slane %v1013_v62, %v5213_v17 }
 0x41b   :  { %v977_v6 = vmax.f32 %v971_v2, 0.0 }
 0x41c   :  { %v978_v8 = vmax.f32 %v973_v4, 0.0 }
 0x41d   :  { %v979_v9 = vpack.c.bf16 %v977_v6, %v975_v5 }
 0x41e   :  { %v980_v10 = vpack.c.bf16 %v978_v8, %v976_v7 }
 0x420   :  { %1217 = vmatprep.mubr.bf16.mxu1 %v980_v10 }
 0x421   :  { %1218 = vmatmul.mubr.bf16.vlgmr.msra.gmra.mrb[4].mxu1 %v979_v9 }
 0x422   :  { %1647 = vmatprep.mubr.bf16.mxu1 %v4629_v0  ;;  %1616 = vmatpush1.bf16.msra.mxu1 %v3942_v16  ;;  %v3953_v0 = vld [vmem:[#allocation13 + $0x34] ss:$8 sps:$4 sm:$0xff]  }
 0x423   :  { %1617 = vmatprep.subr.bf16.mxu1 %v3947_v20  ;;  %v4008_v20 = vld [vmem:[%s5460_s5 + $0xe0] ss:$8 sps:$4 sm:$0xff]  }
 0x426   :  { %1618 = vmatpush1.bf16.msra.mxu1 %v3945_v21  ;;  %v4013_v21 = vld [vmem:[%s5460_s5 + $0xf4] ss:$8 sps:$4 sm:$0xff]  }
 0x427   :  { %1619 = vmatprep.subr.bf16.mxu1 %v3950_v22  ;;  %v4011_v22 = vld [vmem:[%s5460_s5 + $0xf0] ss:$8 sps:$4 sm:$0xff]  }
 0x42a   :  { %1620 = vmatpush1.bf16.msra.mxu1 %v3948_v23  ;;  %v4014_v23 = vld [vmem:[#allocation15] ss:$8 sps:$4 sm:$0xff]  }
 0x42b   :  { %1621 = vmatprep.subr.bf16.mxu1 %v3953_v0  ;;  %v4016_v0 = vld [vmem:[#allocation15 + $0x4] ss:$8 sps:$4 sm:$0xff]  }
 0x42c   :  { %2087 = vmatprep.subr.bf16.mxu0 %v4016_v0 }
 0x42e   :  { %1622 = vmatpush1.bf16.msra.mxu1 %v3951_v24  ;;  %v4019_v24 = vld [vmem:[#allocation15 + $0x14] ss:$8 sps:$4 sm:$0xff]  }
 0x42f   :  { %1623 = vmatprep.subr.bf16.mxu1 %v3956_v25  ;;  %v4017_v25 = vld [vmem:[#allocation15 + $0x10] ss:$8 sps:$4 sm:$0xff]  }
 0x432   :  { %1624 = vmatpush1.bf16.msra.mxu1 %v3954_v26  ;;  %v4022_v26 = vld [vmem:[#allocation15 + $0x24] ss:$8 sps:$4 sm:$0xff]  }
 0x433   :  { %1625 = vmatprep.subr.bf16.mxu1 %v3959_v27  ;;  %v4020_v27 = vld [vmem:[#allocation15 + $0x20] ss:$8 sps:$4 sm:$0xff]  }
 0x436   :  { %1626 = vmatpush1.bf16.msra.mxu1 %v3957_v28  ;;  %v4025_v28 = vld [vmem:[#allocation15 + $0x34] ss:$8 sps:$4 sm:$0xff]  }
 0x437   :  { %1627 = vmatprep.subr.bf16.mxu1 %v3962_v29  ;;  %v4023_v29 = vld [vmem:[#allocation15 + $0x30] ss:$8 sps:$4 sm:$0xff]  }
 0x43a   :  { %1628 = vmatpush1.bf16.msra.mxu1 %v3960_v30  ;;  %v4028_v30 = vld [vmem:[#allocation15 + $0x44] ss:$8 sps:$4 sm:$0xff]  }
 0x43b   :  { %1629 = vmatprep.subr.bf16.mxu1 %v3965_v31  ;;  %v4026_v31 = vld [vmem:[#allocation15 + $0x40] ss:$8 sps:$4 sm:$0xff]  }
 0x43e   :  { %1630 = vmatpush1.bf16.msra.mxu1 %v3963_v32  ;;  %v4031_v32 = vld [vmem:[#allocation15 + $0x54] ss:$8 sps:$4 sm:$0xff]  }
 0x43f   :  { %1818 = vmatprep.subr.bf16.mxu1 %v3968_v33  ;;  %v4029_v33 = vld [vmem:[#allocation15 + $0x50] ss:$8 sps:$4 sm:$0xff]  }
 0x441   :  { %1648 = vmatmul.mubr.bf16.vlgmr.msra.gmra.mrb[8].mxu1 %v4215_v36  ;;  %v4037_v36 = vld [vmem:[#allocation15 + $0x74] ss:$8 sps:$4 sm:$0xff]  }
 0x442   :  { %1819 = vmatpush1.bf16.msra.mxu1 %v3966_v34  ;;  %v4034_v34 = vld [vmem:[#allocation15 + $0x64] ss:$8 sps:$4 sm:$0xff]  }
 0x443   :  { %1820 = vmatprep.subr.bf16.mxu1 %v3971_v35  ;;  %v4032_v35 = vld [vmem:[#allocation15 + $0x60] ss:$8 sps:$4 sm:$0xff]  }
 0x446   :  { %1821 = vmatpush1.bf16.msra.mxu1 %v3969_v37  ;;  %v4035_v37 = vld [vmem:[#allocation15 + $0x70] ss:$8 sps:$4 sm:$0xff]  }
 0x447   :  { %1822 = vmatprep.subr.bf16.mxu1 %v3974_v38  ;;  %v4040_v38 = vld [vmem:[#allocation15 + $0x84] ss:$8 sps:$4 sm:$0xff]  }
 0x44a   :  { %1823 = vmatpush1.bf16.msra.mxu1 %v3972_v39  ;;  %v4038_v39 = vld [vmem:[#allocation15 + $0x80] ss:$8 sps:$4 sm:$0xff]  }
 0x44b   :  { %1824 = vmatprep.subr.bf16.mxu1 %v3977_v40  ;;  %v4043_v40 = vld [vmem:[#allocation15 + $0x94] ss:$8 sps:$4 sm:$0xff]  }
 0x44e   :  { %1825 = vmatpush1.bf16.msra.mxu1 %v3975_v41  ;;  %v4041_v41 = vld [vmem:[#allocation15 + $0x90] ss:$8 sps:$4 sm:$0xff]  }
 0x44f   :  { %1826 = vmatprep.subr.bf16.mxu1 %v3980_v42  ;;  %v4046_v42 = vld [vmem:[#allocation15 + $0xa4] ss:$8 sps:$4 sm:$0xff]  }
 0x452   :  { %1827 = vmatpush1.bf16.msra.mxu1 %v3978_v43  ;;  %v4044_v43 = vld [vmem:[#allocation15 + $0xa0] ss:$8 sps:$4 sm:$0xff]  }
 0x453   :  { %1828 = vmatprep.subr.bf16.mxu1 %v3983_v44  ;;  %v4049_v44 = vld [vmem:[#allocation15 + $0xb4] ss:$8 sps:$4 sm:$0xff]  }
 0x456   :  { %1829 = vmatpush1.bf16.msra.mxu1 %v3981_v45  ;;  %v4047_v45 = vld [vmem:[#allocation15 + $0xb0] ss:$8 sps:$4 sm:$0xff]  }
 0x457   :  { %1830 = vmatprep.subr.bf16.mxu1 %v3986_v46  ;;  %v4052_v46 = vld [vmem:[#allocation15 + $0xc4] ss:$8 sps:$4 sm:$0xff]  }
 0x45a   :  { %1831 = vmatpush1.bf16.msra.mxu1 %v3984_v47  ;;  %v4050_v47 = vld [vmem:[#allocation15 + $0xc0] ss:$8 sps:$4 sm:$0xff]  }
 0x45b   :  { %1832 = vmatprep.subr.bf16.mxu1 %v3989_v48  ;;  %v4055_v48 = vld [vmem:[#allocation15 + $0xd4] ss:$8 sps:$4 sm:$0xff]  }
 0x45e   :  { %1833 = vmatpush1.bf16.msra.mxu1 %v3987_v49  ;;  %v4053_v49 = vld [vmem:[#allocation15 + $0xd0] ss:$8 sps:$4 sm:$0xff]  }
 0x45f   :  { %1834 = vmatprep.subr.bf16.mxu1 %v3992_v50  ;;  %v1266_v50 = vld [vmem:[#allocation12] sm:$0x3] }
 0x462   :  { %1835 = vmatpush1.bf16.msra.mxu1 %v3990_v51  ;;  %v1271_v51 = vrot.slane %v1266_v50, %v5213_v17 }
 0x463   :  { %1836 = vmatprep.subr.bf16.mxu1 %v3995_v52  ;;  %v1275_v52 = vrot.slane %v1266_v50, %v5218_v19  ;;  %v4095_v50 = vld [vmem:[#allocation16 + $0xb0] ss:$8 sps:$4 sm:$0xff]  }
 0x466   :  { %1837 = vmatpush1.bf16.msra.mxu1 %v3993_v53 }
 0x467   :  { %1838 = vmatprep.subr.bf16.mxu1 %v3998_v54 }
 0x46a   :  { %1839 = vmatpush1.bf16.msra.mxu1 %v3996_v55 }
 0x46b   :  { %1840 = vmatprep.subr.bf16.mxu1 %v4001_v56 }
 0x46e   :  { %1841 = vmatpush1.bf16.msra.mxu1 %v3999_v57 }
 0x46f   :  { %1842 = vmatprep.subr.bf16.mxu1 %v4004_v58 }
 0x472   :  { %1843 = vmatpush1.bf16.msra.mxu1 %v4002_v59 }
 0x473   :  { %1844 = vmatprep.subr.bf16.mxu1 %v4007_v60 }
 0x476   :  { %1845 = vmatpush1.bf16.msra.mxu1 %v4005_v61 }
 0x477   :  { %1846 = vmatprep.subr.bf16.mxu1 %v4010_v18 }
 0x47a   :  { %1847 = vmatpush1.bf16.msra.mxu1 %v4008_v20 }
 0x47b   :  { %1848 = vmatprep.subr.bf16.mxu1 %v4013_v21 }
 0x47e   :  { %1849 = vmatpush1.bf16.msra.mxu1 %v4011_v22 }
 0x4f4   :  { %v1219_v2 = vpop.f32.mrb[4].mxu1 }
 0x4f5   :  { %v1220_v3 = vadd.f32 %v1219_v2, %v1018_v63  ;;  %v1221_v4 = vpop.f32.mrb[5].mxu1 }
 0x4f6   :  { %v1222_v5 = vadd.f32 %v1221_v4, %v1022_v1  ;;  %v1223_v6 = vpop.f32.mrb[6].mxu1  ;;  %v4058_v4 = vld [vmem:[#allocation15 + $0xe4] ss:$8 sps:$4 sm:$0xff]  }
 0x4f7   :  { %v1224_v7 = vadd.f32 %v1223_v6, %v1018_v63  ;;  %v1225_v8 = vpop.f32.mrb[7].mxu1  ;;  %v1228_v10 = vmax.f32 %v1220_v3, 0.0  ;;  %v4061_v6 = vld [vmem:[#allocation15 + $0xf4] ss:$8 sps:$4 sm:$0xff]  }
 0x4f8   :  { %v1226_v9 = vadd.f32 %v1225_v8, %v1022_v1  ;;  %v1229_v12 = vmax.f32 %v1222_v5, 0.0  ;;  %v4056_v5 = vld [vmem:[#allocation15 + $0xe0] ss:$8 sps:$4 sm:$0xff]   ;;  %v4064_v8 = vld [vmem:[#allocation16 + $0x4] ss:$8 sps:$4 sm:$0xff]  }
 0x4f9   :  { %v1230_v11 = vmax.f32 %v1224_v7, 0.0  ;;  %v4059_v7 = vld [vmem:[#allocation15 + $0xf0] ss:$8 sps:$4 sm:$0xff]  }
 0x4fa   :  { %v1231_v13 = vmax.f32 %v1226_v9, 0.0  ;;  %v1861_v9 = vld [vmem:[%s5407_s14] sm:$0x3] }
 0x4fb   :  { %v1232_v14 = vpack.c.bf16 %v1230_v11, %v1228_v10  ;;  %v1866_v10 = vrot.slane %v1861_v9, %v5213_v17  ;;  %v1870_v11 = vrot.slane %v1861_v9, %v5218_v19  ;;  %v4130_v9 = vld [vmem:[#allocation18 + $0x64] ss:$8 sps:$4 sm:$0xff]  }
 0x4fc   :  { %v1233_v16 = vpack.c.bf16 %v1231_v13, %v1229_v12 }
 0x4fe   :  { %1470 = vmatprep.mubr.bf16.mxu0 %v1233_v16 }
 0x4ff   :  { %1471 = vmatmul.mubr.bf16.vlgmr.msra.gmra.mrb[8].mxu0 %v1232_v14 }
 0x500   :  { %2088 = vmatpush1.bf16.msra.mxu0 %v4014_v23 }
 0x501   :  { %2089 = vmatprep.subr.bf16.mxu0 %v4019_v24 }
 0x504   :  { %2090 = vmatpush1.bf16.msra.mxu0 %v4017_v25 }
 0x505   :  { %2091 = vmatprep.subr.bf16.mxu0 %v4022_v26 }
 0x508   :  { %2092 = vmatpush1.bf16.msra.mxu0 %v4020_v27 }
 0x509   :  { %2093 = vmatprep.subr.bf16.mxu0 %v4025_v28  ;;  %v4062_v28 = vld [vmem:[#allocation16] ss:$8 sps:$4 sm:$0xff]  }
 0x50c   :  { %2094 = vmatpush1.bf16.msra.mxu0 %v4023_v29  ;;  %v4067_v29 = vld [vmem:[#allocation16 + $0x14] ss:$8 sps:$4 sm:$0xff]  }
 0x50d   :  { %2095 = vmatprep.subr.bf16.mxu0 %v4028_v30  ;;  %v4065_v30 = vld [vmem:[#allocation16 + $0x10] ss:$8 sps:$4 sm:$0xff]  }
 0x510   :  { %2096 = vmatpush1.bf16.msra.mxu0 %v4026_v31  ;;  %v4070_v31 = vld [vmem:[#allocation16 + $0x24] ss:$8 sps:$4 sm:$0xff]  }
 0x511   :  { %2097 = vmatprep.subr.bf16.mxu0 %v4031_v32  ;;  %v4068_v32 = vld [vmem:[#allocation16 + $0x20] ss:$8 sps:$4 sm:$0xff]  }
 0x514   :  { %2098 = vmatpush1.bf16.msra.mxu0 %v4029_v33  ;;  %v4073_v33 = vld [vmem:[#allocation16 + $0x34] ss:$8 sps:$4 sm:$0xff]  }
 0x515   :  { %2099 = vmatprep.subr.bf16.mxu0 %v4034_v34  ;;  %v4071_v34 = vld [vmem:[#allocation16 + $0x30] ss:$8 sps:$4 sm:$0xff]  }
 0x518   :  { %2100 = vmatpush1.bf16.msra.mxu0 %v4032_v35  ;;  %v4076_v35 = vld [vmem:[#allocation16 + $0x44] ss:$8 sps:$4 sm:$0xff]  }
 0x519   :  { %2101 = vmatprep.subr.bf16.mxu0 %v4037_v36  ;;  %v4074_v36 = vld [vmem:[#allocation16 + $0x40] ss:$8 sps:$4 sm:$0xff]  }
 0x51c   :  { %2102 = vmatpush1.bf16.msra.mxu0 %v4035_v37  ;;  %v4079_v37 = vld [vmem:[#allocation16 + $0x54] ss:$8 sps:$4 sm:$0xff]  }
 0x51d   :  { %2103 = vmatprep.subr.bf16.mxu0 %v4040_v38  ;;  %v4077_v38 = vld [vmem:[#allocation16 + $0x50] ss:$8 sps:$4 sm:$0xff]  }
 0x520   :  { %2104 = vmatpush1.bf16.msra.mxu0 %v4038_v39  ;;  %v4082_v39 = vld [vmem:[#allocation16 + $0x64] ss:$8 sps:$4 sm:$0xff]  }
 0x521   :  { %2105 = vmatprep.subr.bf16.mxu0 %v4043_v40  ;;  %v4080_v40 = vld [vmem:[#allocation16 + $0x60] ss:$8 sps:$4 sm:$0xff]  }
 0x524   :  { %2106 = vmatpush1.bf16.msra.mxu0 %v4041_v41  ;;  %v4085_v41 = vld [vmem:[#allocation16 + $0x74] ss:$8 sps:$4 sm:$0xff]  }
 0x525   :  { %2107 = vmatprep.subr.bf16.mxu0 %v4046_v42  ;;  %v4083_v42 = vld [vmem:[#allocation16 + $0x70] ss:$8 sps:$4 sm:$0xff]  }
 0x528   :  { %2108 = vmatpush1.bf16.msra.mxu0 %v4044_v43  ;;  %v4088_v43 = vld [vmem:[#allocation16 + $0x84] ss:$8 sps:$4 sm:$0xff]  }
 0x529   :  { %2109 = vmatprep.subr.bf16.mxu0 %v4049_v44  ;;  %v4086_v44 = vld [vmem:[#allocation16 + $0x80] ss:$8 sps:$4 sm:$0xff]  }
 0x52c   :  { %2110 = vmatpush1.bf16.msra.mxu0 %v4047_v45  ;;  %v4091_v45 = vld [vmem:[#allocation16 + $0x94] ss:$8 sps:$4 sm:$0xff]  }
 0x52d   :  { %2111 = vmatprep.subr.bf16.mxu0 %v4052_v46  ;;  %v4089_v46 = vld [vmem:[#allocation16 + $0x90] ss:$8 sps:$4 sm:$0xff]  }
 0x530   :  { %2112 = vmatpush1.bf16.msra.mxu0 %v4050_v47  ;;  %v4094_v47 = vld [vmem:[#allocation16 + $0xa4] ss:$8 sps:$4 sm:$0xff]  }
 0x531   :  { %2113 = vmatprep.subr.bf16.mxu0 %v4055_v48  ;;  %v4092_v48 = vld [vmem:[#allocation16 + $0xa0] ss:$8 sps:$4 sm:$0xff]  }
 0x534   :  { %2114 = vmatpush1.bf16.msra.mxu0 %v4053_v49  ;;  %v4097_v49 = vld [vmem:[#allocation16 + $0xb4] ss:$8 sps:$4 sm:$0xff]  }
 0x535   :  { %2115 = vmatprep.subr.bf16.mxu0 %v4058_v4  ;;  %v4119_v4 = vld [vmem:[#allocation18 + $0x30] ss:$8 sps:$4 sm:$0xff]  }
 0x538   :  { %2116 = vmatpush1.bf16.msra.mxu0 %v4056_v5  ;;  %v4124_v5 = vld [vmem:[#allocation18 + $0x44] ss:$8 sps:$4 sm:$0xff]  }
 0x539   :  { %2117 = vmatprep.subr.bf16.mxu0 %v4061_v6  ;;  %v4122_v6 = vld [vmem:[#allocation18 + $0x40] ss:$8 sps:$4 sm:$0xff]  }
 0x53c   :  { %2118 = vmatpush1.bf16.msra.mxu0 %v4059_v7  ;;  %v4127_v7 = vld [vmem:[#allocation18 + $0x54] ss:$8 sps:$4 sm:$0xff]  }
 0x53d   :  { %2340 = vmatprep.subr.bf16.mxu0 %v4064_v8  ;;  %v4125_v8 = vld [vmem:[#allocation18 + $0x50] ss:$8 sps:$4 sm:$0xff]  }
 0x5d2   :  { %v1472_v53 = vpop.f32.mrb[8].mxu0 }
 0x5d3   :  { %v1473_v54 = vadd.f32 %v1472_v53, %v1271_v51  ;;  %v1474_v55 = vpop.f32.mrb[9].mxu0  ;;  %v4103_v53 = vld [vmem:[#allocation16 + $0xd4] ss:$8 sps:$4 sm:$0xff]  }
 0x5d4   :  { %v1475_v56 = vadd.f32 %v1474_v55, %v1275_v52  ;;  %v1476_v57 = vpop.f32.mrb[10].mxu0  ;;  %v4106_v55 = vld [vmem:[#allocation16 + $0xe4] ss:$8 sps:$4 sm:$0xff]  }
 0x5d5   :  { %v1477_v58 = vadd.f32 %v1476_v57, %v1271_v51  ;;  %v1478_v59 = vpop.f32.mrb[11].mxu0  ;;  %v1481_v61 = vmax.f32 %v1473_v54, 0.0  ;;  %v4100_v51 = vld [vmem:[#allocation16 + $0xc4] ss:$8 sps:$4 sm:$0xff]   ;;  %v4101_v54 = vld [vmem:[#allocation16 + $0xd0] ss:$8 sps:$4 sm:$0xff]  }
 0x5d6   :  { %v1479_v60 = vadd.f32 %v1478_v59, %v1275_v52  ;;  %v1482_v63 = vmax.f32 %v1475_v56, 0.0  ;;  %v4098_v52 = vld [vmem:[#allocation16 + $0xc0] ss:$8 sps:$4 sm:$0xff]   ;;  %v4109_v57 = vld [vmem:[#allocation16 + $0xf4] ss:$8 sps:$4 sm:$0xff]  }
 0x5d7   :  { %v1483_v62 = vmax.f32 %v1477_v58, 0.0  ;;  %v4104_v56 = vld [vmem:[#allocation16 + $0xe0] ss:$8 sps:$4 sm:$0xff]   ;;  %v4107_v58 = vld [vmem:[#allocation16 + $0xf0] ss:$8 sps:$4 sm:$0xff]  }
 0x5d8   :  { %v1484_v1 = vmax.f32 %v1479_v60, 0.0  ;;  %v4110_v59 = vld [vmem:[#allocation18] ss:$8 sps:$4 sm:$0xff]   ;;  %v4112_v60 = vld [vmem:[#allocation18 + $0x4] ss:$8 sps:$4 sm:$0xff]  }
 0x5d9   :  { %v1485_v2 = vpack.c.bf16 %v1483_v62, %v1481_v61  ;;  %v4115_v61 = vld [vmem:[#allocation18 + $0x14] ss:$8 sps:$4 sm:$0xff]   ;;  %2593 = vmatprep.subr.bf16.mxu1 %v4112_v60  ;;  %v4113_v62 = vld [vmem:[#allocation18 + $0x10] ss:$8 sps:$4 sm:$0xff]  }
 0x5da   :  { %v1486_v3 = vpack.c.bf16 %v1484_v1, %v1482_v63  ;;  %v4118_v63 = vld [vmem:[#allocation18 + $0x24] ss:$8 sps:$4 sm:$0xff]   ;;  %v4172_v60 = vld [vmem:[#allocation19 + $0x78] sm:$0xff]  }
 0x5db   :  { %v4137_v1 = vld [vmem:[#allocation19 + $0x40] sm:$0xff]  }
 0x5dc   :  { %1850 = vmatprep.mubr.bf16.mxu1 %v1486_v3  ;;  %v4121_v3 = vld [vmem:[#allocation18 + $0x34] ss:$8 sps:$4 sm:$0xff]  }
 0x5dd   :  { %1851 = vmatmul.mubr.bf16.vlgmr.msra.gmra.mrb[8].mxu1 %v1485_v2  ;;  %v4116_v2 = vld [vmem:[#allocation18 + $0x20] ss:$8 sps:$4 sm:$0xff]  }
 0x5de   :  { %2594 = vmatpush1.bf16.msra.mxu1 %v4110_v59  ;;  %v4171_v59 = vld [vmem:[#allocation18 + $0xf4] ss:$8 sps:$4 sm:$0xff]  }
 0x5df   :  { %2595 = vmatprep.subr.bf16.mxu1 %v4115_v61  ;;  %v4169_v61 = vld [vmem:[#allocation18 + $0xf0] ss:$8 sps:$4 sm:$0xff]  }
 0x5e2   :  { %2596 = vmatpush1.bf16.msra.mxu1 %v4113_v62  ;;  %v4173_v62 = vld [vmem:[#allocation19 + $0x38] sm:$0xff]  }
 0x5e3   :  { %2597 = vmatprep.subr.bf16.mxu1 %v4118_v63  ;;  %v4174_v63 = vld [vmem:[#allocation21 + $0x40] sm:$0xff]  }
 0x5e6   :  { %2598 = vmatpush1.bf16.msra.mxu1 %v4116_v2  ;;  %v2168_v2 = vld [vmem:[%s5411_s18] sm:$0x3] }
 0x5e7   :  { %2599 = vmatprep.subr.bf16.mxu1 %v4121_v3  ;;  %v2173_v3 = vrot.slane %v2168_v2, %v5213_v17 }
 0x5ea   :  { %2600 = vmatpush1.bf16.msra.mxu1 %v4119_v4  ;;  %v2177_v4 = vrot.slane %v2168_v2, %v5218_v19 }
 0x5eb   :  { %2601 = vmatprep.subr.bf16.mxu1 %v4124_v5 }
 0x5ee   :  { %2602 = vmatpush1.bf16.msra.mxu1 %v4122_v6 }
 0x5ef   :  { %2603 = vmatprep.subr.bf16.mxu1 %v4127_v7 }
 0x5f2   :  { %2604 = vmatpush1.bf16.msra.mxu1 %v4125_v8 }
 0x5f3   :  { %2605 = vmatprep.subr.bf16.mxu1 %v4130_v9 }
 0x6b0   :  { %v1852_v12 = vpop.f32.mrb[8].mxu1 }
 0x6b1   :  { %v1873_v13 = vadd.f32 %v1866_v10, %v1852_v12  ;;  %v1854_v14 = vpop.f32.mrb[9].mxu1  ;;  %v4131_v12 = vld [vmem:[#allocation18 + $0x70] ss:$8 sps:$4 sm:$0xff]  }
 0x6b2   :  { %v1874_v16 = vadd.f32 %v1870_v11, %v1854_v14  ;;  %v1856_v18 = vpop.f32.mrb[10].mxu1  ;;  %v4134_v14 = vld [vmem:[#allocation18 + $0x80] ss:$8 sps:$4 sm:$0xff]  }
 0x6b3   :  { %v1875_v20 = vadd.f32 %v1866_v10, %v1856_v18  ;;  %v1858_v21 = vpop.f32.mrb[11].mxu1  ;;  %v1877_v23 = vmax.f32 %v1873_v13, 0.0  ;;  %v4128_v10 = vld [vmem:[#allocation18 + $0x60] ss:$8 sps:$4 sm:$0xff]   ;;  %v4136_v13 = vld [vmem:[#allocation18 + $0x84] ss:$8 sps:$4 sm:$0xff]  }
 0x6b4   :  { %v1876_v22 = vadd.f32 %v1870_v11, %v1858_v21  ;;  %v1878_v24 = vmax.f32 %v1874_v16, 0.0  ;;  %v4133_v11 = vld [vmem:[#allocation18 + $0x74] ss:$8 sps:$4 sm:$0xff]   ;;  %2606 = vmatpush1.bf16.msra.mxu1 %v4128_v10  ;;  %v4139_v18 = vld [vmem:[#allocation18 + $0x90] ss:$8 sps:$4 sm:$0xff]  }
 0x6b5   :  { %v1879_v0 = vmax.f32 %v1875_v20, 0.0  ;;  %2607 = vmatprep.subr.bf16.mxu1 %v4133_v11  ;;  %v4141_v16 = vld [vmem:[#allocation18 + $0x94] ss:$8 sps:$4 sm:$0xff]   ;;  %v4146_v20 = vld [vmem:[#allocation18 + $0xa4] ss:$8 sps:$4 sm:$0xff]  }
 0x6b6   :  { %v1880_v25 = vmax.f32 %v1876_v22, 0.0  ;;  %v4144_v21 = vld [vmem:[#allocation18 + $0xa0] ss:$8 sps:$4 sm:$0xff]   ;;  %v4151_v22 = vld [vmem:[#allocation18 + $0xb4] ss:$8 sps:$4 sm:$0xff]  }
 0x6b7   :  { %v1881_v26 = vpack.c.bf16 %v1879_v0, %v1877_v23  ;;  %v4149_v23 = vld [vmem:[#allocation18 + $0xb0] ss:$8 sps:$4 sm:$0xff]   ;;  %v4156_v0 = vld [vmem:[#allocation18 + $0xc4] ss:$8 sps:$4 sm:$0xff]  }
 0x6b8   :  { %v1882_v27 = vpack.c.bf16 %v1880_v25, %v1878_v24  ;;  %2608 = vmatpush1.bf16.msra.mxu1 %v4131_v12  ;;  %v4154_v24 = vld [vmem:[#allocation18 + $0xc0] ss:$8 sps:$4 sm:$0xff]   ;;  %v4161_v25 = vld [vmem:[#allocation18 + $0xd4] ss:$8 sps:$4 sm:$0xff]  }
 0x6b9   :  { %2609 = vmatprep.subr.bf16.mxu1 %v4136_v13 }
 0x6ba   :  { %2119 = vmatprep.mubr.bf16.mxu0 %v1882_v27  ;;  %v1915_v27 = vld [vmem:[%s5409_s16] sm:$0x3] }
 0x6bb   :  { %2120 = vmatmul.mubr.bf16.vlgmr.msra.gmra.mrb[12].mxu0 %v1881_v26  ;;  %v4159_v26 = vld [vmem:[#allocation18 + $0xd0] ss:$8 sps:$4 sm:$0xff]  }
 0x6bc   :  { %2341 = vmatpush1.bf16.msra.mxu0 %v4062_v28  ;;  %2610 = vmatpush1.bf16.msra.mxu1 %v4134_v14  ;;  %v1920_v28 = vrot.slane %v1915_v27, %v5213_v17 }
 0x6bd   :  { %2342 = vmatprep.subr.bf16.mxu0 %v4067_v29  ;;  %2611 = vmatprep.subr.bf16.mxu1 %v4141_v16  ;;  %v1924_v29 = vrot.slane %v1915_v27, %v5218_v19  ;;  %v4181_v27 = vld [vmem:[#allocation22 + $0x10] sm:$0xff]  }
 0x6c0   :  { %2343 = vmatpush1.bf16.msra.mxu0 %v4065_v30  ;;  %2612 = vmatpush1.bf16.msra.mxu1 %v4139_v18 }
 0x6c1   :  { %2344 = vmatprep.subr.bf16.mxu0 %v4070_v31  ;;  %2613 = vmatprep.subr.bf16.mxu1 %v4146_v20 }
 0x6c4   :  { %2345 = vmatpush1.bf16.msra.mxu0 %v4068_v32  ;;  %2614 = vmatpush1.bf16.msra.mxu1 %v4144_v21 }
 0x6c5   :  { %2346 = vmatprep.subr.bf16.mxu0 %v4073_v33  ;;  %2615 = vmatprep.subr.bf16.mxu1 %v4151_v22  ;;  %v4175_v22 = vld [vmem:[#allocation22] sm:$0xff]  }
 0x6c8   :  { %2347 = vmatpush1.bf16.msra.mxu0 %v4071_v34  ;;  %2616 = vmatpush1.bf16.msra.mxu1 %v4149_v23  ;;  %v4176_v23 = vld [vmem:[#allocation21] sm:$0xff]  }
 0x6c9   :  { %2348 = vmatprep.subr.bf16.mxu0 %v4076_v35  ;;  %2617 = vmatprep.subr.bf16.mxu1 %v4156_v0  ;;  %v4177_v0 = vld [vmem:[#allocation21 + $0x48] sm:$0xff]  }
 0x6cc   :  { %2349 = vmatpush1.bf16.msra.mxu0 %v4074_v36  ;;  %2618 = vmatpush1.bf16.msra.mxu1 %v4154_v24  ;;  %v4178_v24 = vld [vmem:[#allocation22 + $0x8] sm:$0xff]  }
 0x6cd   :  { %2350 = vmatprep.subr.bf16.mxu0 %v4079_v37  ;;  %2619 = vmatprep.subr.bf16.mxu1 %v4161_v25  ;;  %v4179_v25 = vld [vmem:[#allocation21 + $0x8] sm:$0xff]  }
 0x6d0   :  { %2351 = vmatpush1.bf16.msra.mxu0 %v4077_v38  ;;  %2620 = vmatpush1.bf16.msra.mxu1 %v4159_v26  ;;  %v4180_v26 = vld [vmem:[#allocation21 + $0x50] sm:$0xff]  }
 0x6d1   :  { %2352 = vmatprep.subr.bf16.mxu0 %v4082_v39 }
 0x6d4   :  { %2353 = vmatpush1.bf16.msra.mxu0 %v4080_v40 }
 0x6d5   :  { %2354 = vmatprep.subr.bf16.mxu0 %v4085_v41 }
 0x6d8   :  { %2355 = vmatpush1.bf16.msra.mxu0 %v4083_v42 }
 0x6d9   :  { %2356 = vmatprep.subr.bf16.mxu0 %v4088_v43 }
 0x6dc   :  { %2357 = vmatpush1.bf16.msra.mxu0 %v4086_v44  ;;  %v4138_v44 = vld [vmem:[#allocation19] sm:$0xff]  }
 0x6dd   :  { %2358 = vmatprep.subr.bf16.mxu0 %v4091_v45  ;;  %v4142_v45 = vld [vmem:[#allocation19 + $0x48] sm:$0xff]  }
 0x6e0   :  { %2359 = vmatpush1.bf16.msra.mxu0 %v4089_v46  ;;  %v4143_v46 = vld [vmem:[#allocation19 + $0x8] sm:$0xff]  }
 0x6e1   :  { %2360 = vmatprep.subr.bf16.mxu0 %v4094_v47  ;;  %v4147_v47 = vld [vmem:[#allocation19 + $0x50] sm:$0xff]  }
 0x6e4   :  { %2361 = vmatpush1.bf16.msra.mxu0 %v4092_v48  ;;  %v4148_v48 = vld [vmem:[#allocation19 + $0x10] sm:$0xff]  }
 0x6e5   :  { %2362 = vmatprep.subr.bf16.mxu0 %v4097_v49  ;;  %v4152_v49 = vld [vmem:[#allocation19 + $0x58] sm:$0xff]  }
 0x6e8   :  { %2363 = vmatpush1.bf16.msra.mxu0 %v4095_v50  ;;  %v4153_v50 = vld [vmem:[#allocation19 + $0x18] sm:$0xff]  }
 0x6e9   :  { %2364 = vmatprep.subr.bf16.mxu0 %v4100_v51  ;;  %v4157_v51 = vld [vmem:[#allocation19 + $0x60] sm:$0xff]  }
 0x6ec   :  { %2365 = vmatpush1.bf16.msra.mxu0 %v4098_v52  ;;  %v4158_v52 = vld [vmem:[#allocation19 + $0x20] sm:$0xff]  }
 0x6ed   :  { %2366 = vmatprep.subr.bf16.mxu0 %v4103_v53  ;;  %v4162_v53 = vld [vmem:[#allocation19 + $0x68] sm:$0xff]  }
 0x6f0   :  { %2367 = vmatpush1.bf16.msra.mxu0 %v4101_v54  ;;  %v4163_v54 = vld [vmem:[#allocation19 + $0x28] sm:$0xff]  }
 0x6f1   :  { %2368 = vmatprep.subr.bf16.mxu0 %v4106_v55  ;;  %v4166_v55 = vld [vmem:[#allocation18 + $0xe4] ss:$8 sps:$4 sm:$0xff]  }
 0x6f2   :  { %2621 = vmatprep.subr.bf16.mxu1 %v4166_v55 }
 0x6f4   :  { %2369 = vmatpush1.bf16.msra.mxu0 %v4104_v56  ;;  %v4167_v56 = vld [vmem:[#allocation19 + $0x70] sm:$0xff]  }
 0x6f5   :  { %2370 = vmatprep.subr.bf16.mxu0 %v4109_v57  ;;  %v4164_v57 = vld [vmem:[#allocation18 + $0xe0] ss:$8 sps:$4 sm:$0xff]  }
 0x6f6   :  { %2622 = vmatpush1.bf16.msra.mxu1 %v4164_v57 }
 0x6f7   :  { %2623 = vmatprep.subr.bf16.mxu1 %v4171_v59 }
 0x6f8   :  { %2371 = vmatpush1.bf16.msra.mxu0 %v4107_v58  ;;  %v4168_v58 = vld [vmem:[#allocation19 + $0x30] sm:$0xff]  }
 0x6f9   :  { %3595 = vmatprep.subr.bf16.mxu0 %v4137_v1  ;;  %v4630_v1 = vmov 0.0  }
 0x6fa   :  { %2624 = vmatpush1.bf16.msra.mxu1 %v4169_v61 }
 0x6fb   :  { %3657 = vmatprep.subr.bf16.mxu1 %v4630_v1 }
 0x78e   :  { %v2121_v30 = vpop.f32.mrb[12].mxu0 }
 0x78f   :  { %v2122_v31 = vadd.f32 %v2121_v30, %v1920_v28  ;;  %v2123_v32 = vpop.f32.mrb[13].mxu0  ;;  %v4184_v30 = vld [vmem:[#allocation22 + $0x18] sm:$0xff]  }
 0x790   :  { %v2124_v33 = vadd.f32 %v2123_v32, %v1924_v29  ;;  %v2125_v34 = vpop.f32.mrb[14].mxu0  ;;  %v4186_v32 = vld [vmem:[#allocation21 + $0x60] sm:$0xff]  }
 0x791   :  { %v2126_v35 = vadd.f32 %v2125_v34, %v1920_v28  ;;  %v2127_v36 = vpop.f32.mrb[15].mxu0  ;;  %v2130_v38 = vmax.f32 %v2122_v31, 0.0  ;;  %v4182_v28 = vld [vmem:[#allocation21 + $0x10] sm:$0xff]   ;;  %v4185_v31 = vld [vmem:[#allocation21 + $0x18] sm:$0xff]   ;;  %v4188_v34 = vld [vmem:[#allocation21 + $0x20] sm:$0xff]  }
 0x792   :  { %v2128_v37 = vadd.f32 %v2127_v36, %v1924_v29  ;;  %v2131_v40 = vmax.f32 %v2124_v33, 0.0  ;;  %v4183_v29 = vld [vmem:[#allocation21 + $0x58] sm:$0xff]   ;;  %v4187_v33 = vld [vmem:[#allocation22 + $0x20] sm:$0xff]   ;;  %v4190_v36 = vld [vmem:[#allocation22 + $0x28] sm:$0xff]  }
 0x793   :  { %v2132_v39 = vmax.f32 %v2126_v35, 0.0  ;;  %v4189_v35 = vld [vmem:[#allocation21 + $0x68] sm:$0xff]  }
 0x794   :  { %v2133_v41 = vmax.f32 %v2128_v37, 0.0  ;;  %v4191_v37 = vld [vmem:[#allocation21 + $0x28] sm:$0xff]  }
 0x795   :  { %v2134_v42 = vpack.c.bf16 %v2132_v39, %v2130_v38  ;;  %v4192_v38 = vld [vmem:[#allocation21 + $0x70] sm:$0xff]  }
 0x796   :  { %v2135_v43 = vpack.c.bf16 %v2133_v41, %v2131_v40  ;;  %v4193_v39 = vld [vmem:[#allocation22 + $0x30] sm:$0xff]   ;;  %v4195_v41 = vld [vmem:[#allocation21 + $0x78] sm:$0xff]  }
 0x797   :  { %v4194_v40 = vld [vmem:[#allocation21 + $0x30] sm:$0xff]  }
 0x798   :  { %2372 = vmatprep.mubr.bf16.mxu0 %v2135_v43  ;;  %v4197_v43 = vld [vmem:[#allocation21 + $0x38] sm:$0xff]  }
 0x799   :  { %2373 = vmatmul.mubr.bf16.vlgmr.msra.gmra.mrb[16].mxu0 %v2134_v42  ;;  %v4196_v42 = vld [vmem:[#allocation22 + $0x38] sm:$0xff]  }
 0x79a   :  { %3596 = vmatpush3.bf16.msra.mxu0 %v4138_v44  ;;  %v4198_v44 = vld [vmem:[%s5461_s27] sm:$0xff]  }
 0x79b   :  { %3597 = vmatprep.subr.bf16.mxu0 %v4142_v45  ;;  %v4199_v45 = vld [vmem:[#allocation25] sm:$0xff]  }
 0x79e   :  { %3598 = vmatpush3.bf16.msra.mxu0 %v4143_v46  ;;  %v4200_v46 = vld [vmem:[#allocation25 + $0x8] sm:$0xff]  }
 0x79f   :  { %3599 = vmatprep.subr.bf16.mxu0 %v4147_v47  ;;  %v4201_v47 = vld [vmem:[#allocation25 + $0x10] sm:$0xff]  }
 0x7a2   :  { %3600 = vmatpush3.bf16.msra.mxu0 %v4148_v48  ;;  %v4202_v48 = vld [vmem:[#allocation25 + $0x18] sm:$0xff]  }
 0x7a3   :  { %3601 = vmatprep.subr.bf16.mxu0 %v4152_v49  ;;  %v4203_v49 = vld [vmem:[#allocation25 + $0x20] sm:$0xff]  }
 0x7a6   :  { %3602 = vmatpush3.bf16.msra.mxu0 %v4153_v50  ;;  %v2421_v50 = vld [vmem:[%s5413_s20] sm:$0x3] }
 0x7a7   :  { %3603 = vmatprep.subr.bf16.mxu0 %v4157_v51  ;;  %v2426_v51 = vrot.slane %v2421_v50, %v5213_v17 }
 0x7aa   :  { %3604 = vmatpush3.bf16.msra.mxu0 %v4158_v52 }
 0x7ab   :  { %3605 = vmatprep.subr.bf16.mxu0 %v4162_v53 }
 0x7ae   :  { %3606 = vmatpush3.bf16.msra.mxu0 %v4163_v54  ;;  %v2430_v54 = vrot.slane %v2421_v50, %v5218_v19 }
 0x7af   :  { %3607 = vmatprep.subr.bf16.mxu0 %v4167_v56 }
 0x7b2   :  { %3608 = vmatpush3.bf16.msra.mxu0 %v4168_v58 }
 0x7b3   :  { %3609 = vmatprep.subr.bf16.mxu0 %v4172_v60 }
 0x7b6   :  { %3610 = vmatpush3.bf16.msra.mxu0 %v4173_v62 }
 0x7b7   :  { %3626 = vmatprep.subr.bf16.mxu0 %v4174_v63 }
 0x86c   :  { %v2374_v5 = vpop.f32.mrb[16].mxu0 }
 0x86d   :  { %v2375_v6 = vadd.f32 %v2374_v5, %v2173_v3  ;;  %v2376_v7 = vpop.f32.mrb[17].mxu0 }
 0x86e   :  { %v2377_v8 = vadd.f32 %v2376_v7, %v2177_v4  ;;  %v2378_v9 = vpop.f32.mrb[18].mxu0 }
 0x86f   :  { %v2379_v10 = vadd.f32 %v2378_v9, %v2173_v3  ;;  %v2380_v11 = vpop.f32.mrb[19].mxu0  ;;  %v2383_v13 = vmax.f32 %v2375_v6, 0.0 }
 0x870   :  { %v2381_v12 = vadd.f32 %v2380_v11, %v2177_v4  ;;  %v2384_v16 = vmax.f32 %v2377_v8, 0.0  ;;  %v4204_v8 = vld [vmem:[#allocation25 + $0x28] sm:$0xff]   ;;  %v4206_v11 = vld [vmem:[#allocation25 + $0x38] sm:$0xff]  }
 0x871   :  { %v2385_v14 = vmax.f32 %v2379_v10, 0.0  ;;  %v4205_v10 = vld [vmem:[#allocation25 + $0x30] sm:$0xff]  }
 0x872   :  { %v2386_v18 = vmax.f32 %v2381_v12, 0.0 }
 0x873   :  { %v2387_v20 = vpack.c.bf16 %v2385_v14, %v2383_v13 }
 0x874   :  { %v2388_v21 = vpack.c.bf16 %v2386_v18, %v2384_v16  ;;  %v3583_v18 = vld [vmem:[#allocation24] ss:$0 sm:$0xff] }
 0x876   :  { %2625 = vmatprep.mubr.bf16.mxu1 %v2388_v21  ;;  %2803 = vmatprep.mubr.bf16.mxu0 %v2388_v21 }
 0x877   :  { %2626 = vmatmul.mubr.bf16.vlgmr.msra.gmra.mrb[12].mxu1 %v2387_v20  ;;  %2804 = vmatmul.mubr.bf16.vlgmr.msra.gmra.mrb[20].mxu0 %v2387_v20 }
 0x878   :  { %3658 = vmatpush3.bf16.msra.mxu1 %v4175_v22  ;;  %3627 = vmatpush3.bf16.msra.mxu0 %v4176_v23 }
 0x879   :  { %3659 = vmatprep.subr.bf16.mxu1 %v4630_v1  ;;  %3628 = vmatprep.subr.bf16.mxu0 %v4177_v0 }
 0x87a   :  { %3673 = vmatprep.mubr.msk.bf16.mxu1 %vm4631_vm0, %v4630_v1 }
 0x87c   :  { %3660 = vmatpush3.bf16.msra.mxu1 %v4178_v24  ;;  %3629 = vmatpush3.bf16.msra.mxu0 %v4179_v25 }
 0x87d   :  { %3661 = vmatprep.subr.bf16.mxu1 %v4630_v1  ;;  %3630 = vmatprep.subr.bf16.mxu0 %v4180_v26 }
 0x880   :  { %3662 = vmatpush3.bf16.msra.mxu1 %v4181_v27  ;;  %3631 = vmatpush3.bf16.msra.mxu0 %v4182_v28  ;;  %v3584_v28 = vld [vmem:[#allocation27] ss:$0 sm:$0xff] }
 0x881   :  { %3663 = vmatprep.subr.bf16.mxu1 %v4630_v1  ;;  %3632 = vmatprep.subr.bf16.mxu0 %v4183_v29 }
 0x884   :  { %3664 = vmatpush3.bf16.msra.mxu1 %v4184_v30  ;;  %3633 = vmatpush3.bf16.msra.mxu0 %v4185_v31 }
 0x885   :  { %3665 = vmatprep.subr.bf16.mxu1 %v4630_v1  ;;  %3634 = vmatprep.subr.bf16.mxu0 %v4186_v32 }
 0x888   :  { %3666 = vmatpush3.bf16.msra.mxu1 %v4187_v33  ;;  %3635 = vmatpush3.bf16.msra.mxu0 %v4188_v34 }
 0x889   :  { %3667 = vmatprep.subr.bf16.mxu1 %v4630_v1  ;;  %3636 = vmatprep.subr.bf16.mxu0 %v4189_v35 }
 0x88c   :  { %3668 = vmatpush3.bf16.msra.mxu1 %v4190_v36  ;;  %3637 = vmatpush3.bf16.msra.mxu0 %v4191_v37 }
 0x88d   :  { %3669 = vmatprep.subr.bf16.mxu1 %v4630_v1  ;;  %3638 = vmatprep.subr.bf16.mxu0 %v4192_v38 }
 0x890   :  { %3670 = vmatpush3.bf16.msra.mxu1 %v4193_v39  ;;  %3639 = vmatpush3.bf16.msra.mxu0 %v4194_v40  ;;  %v3541_v40 = vld [vmem:[%s5462_s28] ss:$0 sm:$0xff] }
 0x891   :  { %3671 = vmatprep.subr.bf16.mxu1 %v4630_v1  ;;  %3640 = vmatprep.subr.bf16.mxu0 %v4195_v41  ;;  %v3219_v41 = vand.u32 127, %v330_v15 }
 0x893   :  { %vm3220_vm1 = vcmp.lt.s32.totalorder %v3219_v41, 3 }
 0x894   :  { %3672 = vmatpush3.bf16.msra.mxu1 %v4196_v42  ;;  %3641 = vmatpush3.bf16.msra.mxu0 %v4197_v43 }
 0x895   :  { %3677 = vmatprep.subr.bf16.mxu1 %v4630_v1 }
 0x897   :  { %3674 = vmatmul.mubr.bf16.vlgmr.msra.gmra.mrb[16].mxu1 %v4198_v44 }
 0x898   :  { %3693 = vmatprep.mubr.msk.bf16.mxu1 %vm4631_vm0, %v4630_v1  ;;  %3678 = vmatpush3.bf16.msra.mxu1 %v4199_v45 }
 0x899   :  { %3679 = vmatprep.subr.bf16.mxu1 %v4630_v1 }
 0x89c   :  { %3680 = vmatpush3.bf16.msra.mxu1 %v4200_v46 }
 0x89d   :  { %3681 = vmatprep.subr.bf16.mxu1 %v4630_v1 }
 0x8a0   :  { %3682 = vmatpush3.bf16.msra.mxu1 %v4201_v47 }
 0x8a1   :  { %3683 = vmatprep.subr.bf16.mxu1 %v4630_v1 }
 0x8a4   :  { %3684 = vmatpush3.bf16.msra.mxu1 %v4202_v48 }
 0x8a5   :  { %3685 = vmatprep.subr.bf16.mxu1 %v4630_v1 }
 0x8a8   :  { %3686 = vmatpush3.bf16.msra.mxu1 %v4203_v49 }
 0x8a9   :  { %3687 = vmatprep.subr.bf16.mxu1 %v4630_v1 }
 0x8ac   :  { %3688 = vmatpush3.bf16.msra.mxu1 %v4204_v8 }
 0x8ad   :  { %3689 = vmatprep.subr.bf16.mxu1 %v4630_v1 }
 0x8b0   :  { %3690 = vmatpush3.bf16.msra.mxu1 %v4205_v10 }
 0x8b1   :  { %3691 = vmatprep.subr.bf16.mxu1 %v4630_v1 }
 0x8b4   :  { %3692 = vmatpush3.bf16.msra.mxu1 %v4206_v11 }
 0x94a   :  { %v2627_v52 = vpop.f32.mrb[12].mxu1  ;;  %v3611_v53 = vpop.f32.mrb[20].mxu0 }
 0x94b   :  { %v2629_v55 = vpop.f32.mrb[13].mxu1  ;;  %v3612_v56 = vpop.f32.mrb[21].mxu0  ;;  %v2628_v60 = vadd.f32 %v2627_v52, %v2426_v51 }
 0x94c   :  { %v3613_v57 = vadd.f32 %v3612_v56, %v3611_v53  ;;  %v2631_v58 = vpop.f32.mrb[14].mxu1  ;;  %v3614_v59 = vpop.f32.mrb[22].mxu0  ;;  %v2630_v2 = vadd.f32 %v2629_v55, %v2430_v54 }
 0x94d   :  { %v2632_v61 = vadd.f32 %v2631_v58, %v2426_v51  ;;  %v2633_v62 = vpop.f32.mrb[15].mxu1  ;;  %v3615_v63 = vpop.f32.mrb[23].mxu0 }
 0x94e   :  { %v2634_v3 = vadd.f32 %v2633_v62, %v2430_v54  ;;  %v3616_v4 = vadd.f32 %v3615_v63, %v3614_v59  ;;  %v2806_v42 = vadd.f32 %v3613_v57, %v3541_v40 }
 0x94f   :  { %v2812_v5 = vpack.c.bf16 %v2632_v61, %v2628_v60 }
 0x950   :  { %v2813_v6 = vpack.c.bf16 %v2634_v3, %v2630_v2  ;;  %v2809_v43 = vadd.f32 %v3616_v4, %v3541_v40  ;;  %v3233_v44 = vmax.f32 %v2806_v42, 0.0 }
 0x952   :  { %3085 = vmatprep.mubr.bf16.mxu0 %v2813_v6  ;;  %v3234_v46 = vmax.f32 %v2809_v43, 0.0 }
 0x953   :  { %3086 = vmatmul.mubr.bf16.vlgmr.msra.gmra.mrb[24].mxu0 %v2812_v5 }
 0x96a   :  { %v2950_v17 = vpop.f32.mrb[16].mxu1 }
 0x96b   :  { %v3675_v7 = vpop.f32.mrb[17].mxu1 }
 0x96c   :  { %v2953_v19 = vpop.f32.mrb[18].mxu1 }
 0x96d   :  { %v3676_v9 = vpop.f32.mrb[19].mxu1 }
 0xa26   :  { %v3642_v12 = vpop.f32.mrb[24].mxu0 }
 0xa27   :  { %v3643_v13 = vpop.f32.mrb[25].mxu0 }
 0xa28   :  { %v3644_v14 = vadd.f32 %v3643_v13, %v3642_v12  ;;  %v3645_v16 = vpop.f32.mrb[26].mxu0 }
 0xa29   :  { %v3646_v20 = vpop.f32.mrb[27].mxu0 }
 0xa2a   :  { %v3088_v21 = vadd.f32 %v3644_v14, %v2950_v17  ;;  %v3647_v22 = vadd.f32 %v3646_v20, %v3645_v16 }
 0xa2c   :  { %v3101_v23 = vadd.f32 %v3583_v18, %v3088_v21  ;;  %v3091_v0 = vadd.f32 %v3647_v22, %v2953_v19 }
 0xa2e   :  { %v3102_v24 = vadd.f32 %v3583_v18, %v3091_v0  ;;  %v3103_v25 = vmax.f32 %v3101_v23, 0.0 }
 0xa30   :  { %v3104_v26 = vmax.f32 %v3102_v24, 0.0 }
 0xa32   :  { %v3105_v27 = vpack.c.bf16 %v3104_v26, %v3103_v25 }
 0xa34   :  { %3694 = vmatmul.mubr.bf16.vlgmr.msra.gmra.mrb[20].mxu1 %v3105_v27 }
 0xb07   :  { %v3211_v29 = vpop.f32.mrb[20].mxu1 }
 0xb08   :  { %v3212_v1 = vadd.f32 %v3584_v28, %v3211_v29  ;;  %v3695_v30 = vpop.f32.mrb[21].mxu1 }
 0xb09   :  { %v3214_v31 = vpop.f32.mrb[22].mxu1 }
 0xb0a   :  { %v3593_v32 = vmul.f32 -1.442695, %v3212_v1  ;;  %v3215_v33 = vadd.f32 %v3584_v28, %v3214_v31  ;;  %v3696_v34 = vpop.f32.mrb[23].mxu1 }
 0xb0c   :  { %4207 = vpow2.f32 %v3593_v32  ;;  %v3594_v35 = vmul.f32 -1.442695, %v3215_v33 }
 0xb0e   :  { %4209 = vpow2.f32 %v3594_v35 }
 0xb16   :  { %v4208_v36 = vpop.eup %4207 }
 0xb17   :  { %v3227_v37 = vadd.f32 1.0, %v4208_v36 }
 0xb18   :  { %v4210_v38 = vpop.eup %4209 }
 0xb19   :  { %4211 = vrcp.f32 %v3227_v37  ;;  %v3228_v39 = vadd.f32 1.0, %v4210_v38 }
 0xb1b   :  { %4213 = vrcp.f32 %v3228_v39 }
 0xb23   :  { %v4212_v45 = vpop.eup %4211 }
 0xb24   :  { %v3235_v47 = vsel %vm3220_vm1, %v4212_v45, %v3233_v44 }
 0xb25   :  { %v4214_v48 = vpop.eup %4213  ;;  %3237 = vst [vmem:[%s5463_s11] sm:$0xff] %v3235_v47 }
 0xb26   :  { %v3236_v49 = vsel %vm3220_vm1, %v4214_v48, %v3234_v46 }
 0xb27   :  { %3238 = vst [vmem:[%s5463_s11 + $0x8] sm:$0xff] %v3236_v49 }
 0xb28   :  { %3243 = vsyncpa [#allocation3], 1 }
 0xb29   :  { %3244 = vsyncpa [#allocation5], 1 }
 0xb2a   :  { %3245 = vsyncpa [#allocation8], 1 }
 0xb2b   :  { %3246 = vsyncpa [#allocation11], 1 }
 0xb2c   :  { %3247 = vsyncpa [#allocation14], 1 }
 0xb2d   :  { %3248 = vsyncpa [#allocation17], 1 }
 0xb2e   :  { %3249 = vsyncpa [#allocation20], 1 }
 0xb2f   :  { %3250 = vsyncpa [#allocation23], 1 }
 0xb30   :  { %3251 = vsyncpa [#allocation26], 1 }

</bundles_post_ra>
